<compile_context>
chip_gen: v7x
topology: tpu7x:2x2x1
jax: 0.10.0
libtpu: 0.0.40
codegen_flags: <defaults>
</compile_context>

<pallas_src>
import math
import functools

import jax
import jax.numpy as jnp
from jax.experimental import pallas as pl
from jax.experimental.pallas import tpu as pltpu  # noqa: F401 (TPU target)


CFG = dict(
    image_size=16,
    patch_size=8,
    num_channels=4,
    hidden_dim=32,      # == TransformerEncoderConfig.head_dim (must match)
    num_layers=2,
    num_heads=4,
    mlp_dim=64,
    num_classes=10,
    layer_norm_eps=1e-5,   # nn.LayerNorm default (eps arg not passed in __init__)
)


# ----------------------------- in-kernel helpers ----------------------------

def _erf(x):
    # Abramowitz & Stegun 7.1.26 (abs err < 1.5e-7 ~ f32 precision).
    a1, a2, a3, a4, a5 = (0.254829592, -0.284496736, 1.421413741,
                          -1.453152027, 1.061405429)
    p = 0.3275911
    sgn = jnp.where(x >= 0.0, 1.0, -1.0)
    ax = jnp.abs(x)
    t = 1.0 / (1.0 + p * ax)
    poly = ((((a5 * t + a4) * t + a3) * t + a2) * t + a1) * t
    return sgn * (1.0 - poly * jnp.exp(-ax * ax))      # exp -> EUP


def _gelu_exact(x):
    return 0.5 * x * (1.0 + _erf(x * (1.0 / math.sqrt(2.0))))


def _layernorm(x, g, b, eps):
    mu = jnp.mean(x, axis=-1, keepdims=True)
    var = jnp.mean(jnp.square(x - mu), axis=-1, keepdims=True)
    return (x - mu) * jax.lax.rsqrt(var + eps) * g + b


# ----------------------------- fused Pallas kernel --------------------------

def _vit_fused_kernel(patches_ref, addend_ref, patch_w_ref,
                      g_ref, gt_ref,
                      ln1_g_ref, ln1_b_ref,
                      wq_ref, wk_ref, wv_ref, bq_ref, bk_ref, bv_ref,
                      wo_ref, bo_ref,
                      ln2_g_ref, ln2_b_ref,
                      w1_ref, mb1_ref, w2_ref, mb2_ref,
                      head_w_ref, head_b_ref,
                      out_ref,
                      *, B, num_layers, eps, scale):
    f32 = jnp.float32
    dot = functools.partial(jnp.dot, preferred_element_type=f32)

    # Head-membership matrices (constants, precomputed in the wrapper):
    #   G[d, h]  = 1 iff lane d belongs to head h  -> per-head lane reduction
    #   GT[h, d] = 1 iff lane d belongs to head h  -> per-head lane broadcast
    G = g_ref[...]            # (D, nh)
    GT = gt_ref[...]          # (nh, D)
    patch_w = patch_w_ref[...]

    # --- patch embedding + cls/pos additive term (kept per-batch to avoid
    # any cross-batch reshuffle; row 0 of patches is a zero row standing in
    # for the CLS position, whose value comes entirely from `addend`). ---
    h = [dot(patches_ref[b], patch_w) + addend_ref[b]
         for b in range(B)]                                        # B x (S, D)

    for l in range(num_layers):
        # per-layer weight slices loaded once, reused across the batch loop
        ln1_g, ln1_b = ln1_g_ref[l], ln1_b_ref[l]
        wq, wk, wv = wq_ref[l], wk_ref[l], wv_ref[l]
        bq, bk, bv = bq_ref[l], bk_ref[l], bv_ref[l]
        wo, bo = wo_ref[l], bo_ref[l]
        ln2_g, ln2_b = ln2_g_ref[l], ln2_b_ref[l]
        w1, mb1 = w1_ref[l], mb1_ref[l]
        w2, mb2 = w2_ref[l], mb2_ref[l]

        # ---- attention block: h = h + out_proj(attn(norm1(h))) ----
        x1 = [_layernorm(h[b], ln1_g, ln1_b, eps) for b in range(B)]
        q = [dot(x1[b], wq) + bq for b in range(B)]
        k = [dot(x1[b], wk) + bk for b in range(B)]
        v = [dot(x1[b], wv) + bv for b in range(B)]

        # batch_first=False quirk: attention runs over the batch axis
        # (length B); each (sequence position, head) pair is independent.
        attn = []
        for b1 in range(B):
            # per-head scores q[b1].k[b2] for every key b2:   (S, nh) each
            s_list = [dot(q[b1] * k[b2], G) * scale for b2 in range(B)]
            m = s_list[0]
            for b2 in range(1, B):
                m = jnp.maximum(m, s_list[b2])
            p_list = [jnp.exp(s - m) for s in s_list]              # EUP
            denom = p_list[0]
            for b2 in range(1, B):
                denom = denom + p_list[b2]
            inv = pl.reciprocal(denom, approx=True)                # EUP vrcp
            o = None
            for b2 in range(B):
                coeff = dot(p_list[b2] * inv, GT)      # (S, D): per-head bcast
                term = coeff * v[b2]
                o = term if o is None else o + term
            attn.append(o)

        # out-projection with the residual add fused in
        h = [h[b] + dot(attn[b], wo) + bo for b in range(B)]

        # ---- MLP block: h = h + mlp(norm2(h)), residual fused ----
        x2 = [_layernorm(h[b], ln2_g, ln2_b, eps) for b in range(B)]
        hid = [_gelu_exact(dot(x2[b], w1) + mb1) for b in range(B)]
        h = [h[b] + dot(hid[b], w2) + mb2 for b in range(B)]
        # TODO(synk): dropout layers are identity here (eval/inference mode).

    # ---- classification head on the CLS token (row 0 of each batch) ----
    head_w = head_w_ref[...]
    head_b = head_b_ref[...]
    for b in range(B):
        cls = h[b][0:1, :]                                         # (1, D)
        out_ref[b:b + 1, :] = dot(cls, head_w) + head_b


# ----------------------------- parameters -----------------------------------

def init_params(key, cfg):
    D = cfg["hidden_dim"]
    P = cfg["patch_size"]
    C = cfg["num_channels"]
    S = (cfg["image_size"] // P) ** 2 + 1
    mlp = cfg["mlp_dim"]
    ncls = cfg["num_classes"]

    keys = iter(jax.random.split(key, 8 + 8 * cfg["num_layers"]))

    def nrm(shape, scale=0.02):
        return scale * jax.random.normal(next(keys), shape, jnp.float32)

    params = {
        "patch_w": nrm((C * P * P, D)),       # conv weight, flattened (c,ph,pw)
        "patch_b": nrm((D,)),
        "cls_token": jax.random.normal(next(keys), (1, 1, D), jnp.float32),
        "pos_embed": jax.random.normal(next(keys), (1, S, D), jnp.float32),
        "head_w": nrm((D, ncls)),
        "head_b": nrm((ncls,)),
        "layers": [],
    }
    for _ in range(cfg["num_layers"]):
        params["layers"].append({
            "ln1_g": jnp.ones((D,), jnp.float32),
            "ln1_b": jnp.zeros((D,), jnp.float32),
            "in_proj_w": nrm((D, 3 * D)),     # [Wq | Wk | Wv], (in, out) layout
            "in_proj_b": nrm((3 * D,)),
            "out_w": nrm((D, D)),
            "out_b": nrm((D,)),
            "ln2_g": jnp.ones((D,), jnp.float32),
            "ln2_b": jnp.zeros((D,), jnp.float32),
            "mlp_w1": nrm((D, mlp)),
            "mlp_b1": nrm((mlp,)),
            "mlp_w2": nrm((mlp, D)),
            "mlp_b2": nrm((D,)),
        })
    return params


def _pack_layer_params(layers, D):
    # Stack per-layer weights along a leading layer axis (parameter packing,
    # not compute); biases as (L, 1, dim) so in-kernel indexing yields 2D.
    def stack(name):
        return jnp.stack([lp[name] for lp in layers], axis=0)

    in_w = stack("in_proj_w")                       # (L, D, 3D)
    in_b = stack("in_proj_b")                       # (L, 3D)
    return dict(
        ln1_g=stack("ln1_g")[:, None, :], ln1_b=stack("ln1_b")[:, None, :],
        wq=in_w[:, :, 0 * D:1 * D], wk=in_w[:, :, 1 * D:2 * D],
        wv=in_w[:, :, 2 * D:3 * D],
        bq=in_b[:, None, 0 * D:1 * D], bk=in_b[:, None, 1 * D:2 * D],
        bv=in_b[:, None, 2 * D:3 * D],
        wo=stack("out_w"), bo=stack("out_b")[:, None, :],
        ln2_g=stack("ln2_g")[:, None, :], ln2_b=stack("ln2_b")[:, None, :],
        w1=stack("mlp_w1"), mb1=stack("mlp_b1")[:, None, :],
        w2=stack("mlp_w2"), mb2=stack("mlp_b2")[:, None, :],
    )


# ----------------------------- forward wrapper ------------------------------

def vit_forward(params, x, cfg):
    # layout: x is NCHW (B, C, H, W) -- same as the PyTorch module.
    B, C, H, W = x.shape
    P = cfg["patch_size"]
    D = cfg["hidden_dim"]
    nh = cfg["num_heads"]
    dh = D // nh
    eps = cfg["layer_norm_eps"]
    ncls = cfg["num_classes"]
    L = cfg["num_layers"]

    nH, nW = H // P, W // P
    nP = nH * nW
    S = nP + 1
    scale = 1.0 / math.sqrt(dh)

    # --- XLA-side layout glue only (no compute): stride-P patch extraction;
    # a zero row is prepended per batch so the CLS position falls out of the
    # same in-kernel matmul (its value comes entirely from `addend`). ---
    patches = (x.reshape(B, C, nH, P, nW, P)
                 .transpose(0, 2, 4, 1, 3, 5)               # (B, nH, nW, C, P, P)
                 .reshape(B, nP, C * P * P))
    patches = jnp.concatenate(
        [jnp.zeros((B, 1, C * P * P), jnp.float32), patches], axis=1)  # (B,S,CPP)

    # additive token term: row 0 = cls_token + pos[0]; rows 1.. = patch_b + pos[1:]
    addend = jnp.concatenate(
        [params["cls_token"].reshape(1, D) + params["pos_embed"][0, 0:1, :],
         params["patch_b"].reshape(1, D) + params["pos_embed"][0, 1:, :]],
        axis=0)                                              # (S, D)
    addend = jnp.broadcast_to(addend[None, :, :], (B, S, D))

    # Head-membership matrices (constants, folded by XLA before the call):
    #   G[d, h] = 1 iff lane d belongs to head h;  GT = G^T.
    d_idx = jnp.arange(D, dtype=jnp.int32)
    h_idx = jnp.arange(nh, dtype=jnp.int32)
    G = (d_idx[:, None] // dh == h_idx[None, :]).astype(jnp.float32)   # (D, nh)
    GT = jnp.transpose(G)                                              # (nh, D)

    lw = _pack_layer_params(params["layers"], D)

    kernel = functools.partial(
        _vit_fused_kernel, B=B, num_layers=L, eps=eps, scale=scale)

    # Single fused invocation (no grid): every array is a whole-block VMEM ref.
    return pl.pallas_call(
        kernel,
        out_shape=jax.ShapeDtypeStruct((B, ncls), jnp.float32),
    )(patches, addend, params["patch_w"], G, GT,
      lw["ln1_g"], lw["ln1_b"],
      lw["wq"], lw["wk"], lw["wv"], lw["bq"], lw["bk"], lw["bv"],
      lw["wo"], lw["bo"],
      lw["ln2_g"], lw["ln2_b"],
      lw["w1"], lw["mb1"], lw["w2"], lw["mb2"],
      params["head_w"], params["head_b"].reshape(1, ncls))


# ---------------------------------- main ------------------------------------

if __name__ == "__main__":
    key = jax.random.PRNGKey(0)
    pkey, xkey = jax.random.split(key)

    params = init_params(pkey, CFG)
    x = jax.random.normal(
        xkey,
        (2, CFG["num_channels"], CFG["image_size"], CFG["image_size"]),
        jnp.float32,
    )

    fwd = jax.jit(lambda p, xx: vit_forward(p, xx, CFG))
    out = fwd(params, x)
    out = jax.block_until_ready(out)

    assert out.shape == (2, CFG["num_classes"]), out.shape
    assert bool(jnp.all(jnp.isfinite(out)))
    print("KERNEL_OK")
</pallas_src>

<mosaic_0001>
module attributes {stable_mosaic.version = 11 : i64} {
  func.func @_vit_fused_kernel(%arg0: memref<2x5x256xf32, #tpu.memory_space<vmem>>, %arg1: memref<2x5x32xf32, #tpu.memory_space<vmem>>, %arg2: memref<256x32xf32, #tpu.memory_space<vmem>>, %arg3: memref<32x4xf32, #tpu.memory_space<vmem>>, %arg4: memref<4x32xf32, #tpu.memory_space<vmem>>, %arg5: memref<2x1x32xf32, #tpu.memory_space<vmem>>, %arg6: memref<2x1x32xf32, #tpu.memory_space<vmem>>, %arg7: memref<2x32x32xf32, #tpu.memory_space<vmem>>, %arg8: memref<2x32x32xf32, #tpu.memory_space<vmem>>, %arg9: memref<2x32x32xf32, #tpu.memory_space<vmem>>, %arg10: memref<2x1x32xf32, #tpu.memory_space<vmem>>, %arg11: memref<2x1x32xf32, #tpu.memory_space<vmem>>, %arg12: memref<2x1x32xf32, #tpu.memory_space<vmem>>, %arg13: memref<2x32x32xf32, #tpu.memory_space<vmem>>, %arg14: memref<2x1x32xf32, #tpu.memory_space<vmem>>, %arg15: memref<2x1x32xf32, #tpu.memory_space<vmem>>, %arg16: memref<2x1x32xf32, #tpu.memory_space<vmem>>, %arg17: memref<2x32x64xf32, #tpu.memory_space<vmem>>, %arg18: memref<2x1x64xf32, #tpu.memory_space<vmem>>, %arg19: memref<2x64x32xf32, #tpu.memory_space<vmem>>, %arg20: memref<2x1x32xf32, #tpu.memory_space<vmem>>, %arg21: memref<32x10xf32, #tpu.memory_space<vmem>>, %arg22: memref<1x10xf32, #tpu.memory_space<vmem>>, %arg23: memref<2x10xf32, #tpu.memory_space<vmem>>) attributes {dimension_semantics = [], scalar_prefetch = 0 : i64, scratch_operands = 0 : i64, tpu.core_type = #tpu.core_type<tc>} {
    %c0 = arith.constant 0 : index
    %c0_0 = arith.constant 0 : index
    %0 = vector.load %arg3[%c0, %c0_0] : memref<32x4xf32, #tpu.memory_space<vmem>>, vector<32x4xf32>
    %c0_1 = arith.constant 0 : index
    %c0_2 = arith.constant 0 : index
    %1 = vector.load %arg4[%c0_1, %c0_2] : memref<4x32xf32, #tpu.memory_space<vmem>>, vector<4x32xf32>
    %c0_3 = arith.constant 0 : index
    %c0_4 = arith.constant 0 : index
    %2 = vector.load %arg2[%c0_3, %c0_4] : memref<256x32xf32, #tpu.memory_space<vmem>>, vector<256x32xf32>
    %c0_5 = arith.constant 0 : index
    %c0_6 = arith.constant 0 : index
    %c0_7 = arith.constant 0 : index
    %3 = vector.load %arg0[%c0_5, %c0_6, %c0_7] : memref<2x5x256xf32, #tpu.memory_space<vmem>>, vector<1x5x256xf32>
    %4 = vector.shape_cast %3 : vector<1x5x256xf32> to vector<5x256xf32>
    %cst = arith.constant dense<0.000000e+00> : vector<5x32xf32>
    %5 = tpu.matmul %4, %2, %cst {dimension_numbers = #tpu.dot_dimension_numbers<[1], [0], [0], [1], [0, 0, 1, 1], [], []>} : vector<5x256xf32>, vector<256x32xf32>, vector<5x32xf32> -> vector<5x32xf32>
    %c0_8 = arith.constant 0 : index
    %c0_9 = arith.constant 0 : index
    %c0_10 = arith.constant 0 : index
    %6 = vector.load %arg1[%c0_8, %c0_9, %c0_10] : memref<2x5x32xf32, #tpu.memory_space<vmem>>, vector<1x5x32xf32>
    %7 = vector.shape_cast %6 : vector<1x5x32xf32> to vector<5x32xf32>
    %8 = arith.addf %5, %7 : vector<5x32xf32>
    %c1 = arith.constant 1 : index
    %c0_11 = arith.constant 0 : index
    %c0_12 = arith.constant 0 : index
    %9 = vector.load %arg0[%c1, %c0_11, %c0_12] : memref<2x5x256xf32, #tpu.memory_space<vmem>>, vector<1x5x256xf32>
    %10 = vector.shape_cast %9 : vector<1x5x256xf32> to vector<5x256xf32>
    %cst_13 = arith.constant dense<0.000000e+00> : vector<5x32xf32>
    %11 = tpu.matmul %10, %2, %cst_13 {dimension_numbers = #tpu.dot_dimension_numbers<[1], [0], [0], [1], [0, 0, 1, 1], [], []>} : vector<5x256xf32>, vector<256x32xf32>, vector<5x32xf32> -> vector<5x32xf32>
    %c1_14 = arith.constant 1 : index
    %c0_15 = arith.constant 0 : index
    %c0_16 = arith.constant 0 : index
    %12 = vector.load %arg1[%c1_14, %c0_15, %c0_16] : memref<2x5x32xf32, #tpu.memory_space<vmem>>, vector<1x5x32xf32>
    %13 = vector.shape_cast %12 : vector<1x5x32xf32> to vector<5x32xf32>
    %14 = arith.addf %11, %13 : vector<5x32xf32>
    %c0_17 = arith.constant 0 : index
    %c0_18 = arith.constant 0 : index
    %c0_19 = arith.constant 0 : index
    %15 = vector.load %arg5[%c0_17, %c0_18, %c0_19] : memref<2x1x32xf32, #tpu.memory_space<vmem>>, vector<1x1x32xf32>
    %16 = vector.shape_cast %15 : vector<1x1x32xf32> to vector<1x32xf32>
    %c0_20 = arith.constant 0 : index
    %c0_21 = arith.constant 0 : index
    %c0_22 = arith.constant 0 : index
    %17 = vector.load %arg6[%c0_20, %c0_21, %c0_22] : memref<2x1x32xf32, #tpu.memory_space<vmem>>, vector<1x1x32xf32>
    %18 = vector.shape_cast %17 : vector<1x1x32xf32> to vector<1x32xf32>
    %c0_23 = arith.constant 0 : index
    %c0_24 = arith.constant 0 : index
    %c0_25 = arith.constant 0 : index
    %19 = vector.load %arg7[%c0_23, %c0_24, %c0_25] : memref<2x32x32xf32, #tpu.memory_space<vmem>>, vector<1x32x32xf32>
    %20 = vector.shape_cast %19 : vector<1x32x32xf32> to vector<32x32xf32>
    %c0_26 = arith.constant 0 : index
    %c0_27 = arith.constant 0 : index
    %c0_28 = arith.constant 0 : index
    %21 = vector.load %arg8[%c0_26, %c0_27, %c0_28] : memref<2x32x32xf32, #tpu.memory_space<vmem>>, vector<1x32x32xf32>
    %22 = vector.shape_cast %21 : vector<1x32x32xf32> to vector<32x32xf32>
    %c0_29 = arith.constant 0 : index
    %c0_30 = arith.constant 0 : index
    %c0_31 = arith.constant 0 : index
    %23 = vector.load %arg9[%c0_29, %c0_30, %c0_31] : memref<2x32x32xf32, #tpu.memory_space<vmem>>, vector<1x32x32xf32>
    %24 = vector.shape_cast %23 : vector<1x32x32xf32> to vector<32x32xf32>
    %c0_32 = arith.constant 0 : index
    %c0_33 = arith.constant 0 : index
    %c0_34 = arith.constant 0 : index
    %25 = vector.load %arg10[%c0_32, %c0_33, %c0_34] : memref<2x1x32xf32, #tpu.memory_space<vmem>>, vector<1x1x32xf32>
    %26 = vector.shape_cast %25 : vector<1x1x32xf32> to vector<1x32xf32>
    %c0_35 = arith.constant 0 : index
    %c0_36 = arith.constant 0 : index
    %c0_37 = arith.constant 0 : index
    %27 = vector.load %arg11[%c0_35, %c0_36, %c0_37] : memref<2x1x32xf32, #tpu.memory_space<vmem>>, vector<1x1x32xf32>
    %28 = vector.shape_cast %27 : vector<1x1x32xf32> to vector<1x32xf32>
    %c0_38 = arith.constant 0 : index
    %c0_39 = arith.constant 0 : index
    %c0_40 = arith.constant 0 : index
    %29 = vector.load %arg12[%c0_38, %c0_39, %c0_40] : memref<2x1x32xf32, #tpu.memory_space<vmem>>, vector<1x1x32xf32>
    %30 = vector.shape_cast %29 : vector<1x1x32xf32> to vector<1x32xf32>
    %c0_41 = arith.constant 0 : index
    %c0_42 = arith.constant 0 : index
    %c0_43 = arith.constant 0 : index
    %31 = vector.load %arg13[%c0_41, %c0_42, %c0_43] : memref<2x32x32xf32, #tpu.memory_space<vmem>>, vector<1x32x32xf32>
    %32 = vector.shape_cast %31 : vector<1x32x32xf32> to vector<32x32xf32>
    %c0_44 = arith.constant 0 : index
    %c0_45 = arith.constant 0 : index
    %c0_46 = arith.constant 0 : index
    %33 = vector.load %arg14[%c0_44, %c0_45, %c0_46] : memref<2x1x32xf32, #tpu.memory_space<vmem>>, vector<1x1x32xf32>
    %34 = vector.shape_cast %33 : vector<1x1x32xf32> to vector<1x32xf32>
    %c0_47 = arith.constant 0 : index
    %c0_48 = arith.constant 0 : index
    %c0_49 = arith.constant 0 : index
    %35 = vector.load %arg15[%c0_47, %c0_48, %c0_49] : memref<2x1x32xf32, #tpu.memory_space<vmem>>, vector<1x1x32xf32>
    %36 = vector.shape_cast %35 : vector<1x1x32xf32> to vector<1x32xf32>
    %c0_50 = arith.constant 0 : index
    %c0_51 = arith.constant 0 : index
    %c0_52 = arith.constant 0 : index
    %37 = vector.load %arg16[%c0_50, %c0_51, %c0_52] : memref<2x1x32xf32, #tpu.memory_space<vmem>>, vector<1x1x32xf32>
    %38 = vector.shape_cast %37 : vector<1x1x32xf32> to vector<1x32xf32>
    %c0_53 = arith.constant 0 : index
    %c0_54 = arith.constant 0 : index
    %c0_55 = arith.constant 0 : index
    %39 = vector.load %arg17[%c0_53, %c0_54, %c0_55] : memref<2x32x64xf32, #tpu.memory_space<vmem>>, vector<1x32x64xf32>
    %40 = vector.shape_cast %39 : vector<1x32x64xf32> to vector<32x64xf32>
    %c0_56 = arith.constant 0 : index
    %c0_57 = arith.constant 0 : index
    %c0_58 = arith.constant 0 : index
    %41 = vector.load %arg18[%c0_56, %c0_57, %c0_58] : memref<2x1x64xf32, #tpu.memory_space<vmem>>, vector<1x1x64xf32>
    %42 = vector.shape_cast %41 : vector<1x1x64xf32> to vector<1x64xf32>
    %c0_59 = arith.constant 0 : index
    %c0_60 = arith.constant 0 : index
    %c0_61 = arith.constant 0 : index
    %43 = vector.load %arg19[%c0_59, %c0_60, %c0_61] : memref<2x64x32xf32, #tpu.memory_space<vmem>>, vector<1x64x32xf32>
    %44 = vector.shape_cast %43 : vector<1x64x32xf32> to vector<64x32xf32>
    %c0_62 = arith.constant 0 : index
    %c0_63 = arith.constant 0 : index
    %c0_64 = arith.constant 0 : index
    %45 = vector.load %arg20[%c0_62, %c0_63, %c0_64] : memref<2x1x32xf32, #tpu.memory_space<vmem>>, vector<1x1x32xf32>
    %46 = vector.shape_cast %45 : vector<1x1x32xf32> to vector<1x32xf32>
    %cst_65 = arith.constant dense<0.000000e+00> : vector<5xf32>
    %47 = vector.multi_reduction <add>, %8, %cst_65 [1] : vector<5x32xf32> to vector<5xf32>
    %48 = vector.shape_cast %47 : vector<5xf32> to vector<5x1xf32>
    %cst_66 = arith.constant 3.200000e+01 : f32
    %49 = vector.broadcast %cst_66 : f32 to vector<5x1xf32>
    %50 = arith.divf %48, %49 : vector<5x1xf32>
    %51 = vector.broadcast %50 : vector<5x1xf32> to vector<5x32xf32>
    %52 = arith.subf %8, %51 : vector<5x32xf32>
    %53 = arith.mulf %52, %52 : vector<5x32xf32>
    %cst_67 = arith.constant dense<0.000000e+00> : vector<5xf32>
    %54 = vector.multi_reduction <add>, %53, %cst_67 [1] : vector<5x32xf32> to vector<5xf32>
    %55 = vector.shape_cast %54 : vector<5xf32> to vector<5x1xf32>
    %cst_68 = arith.constant 3.200000e+01 : f32
    %56 = vector.broadcast %cst_68 : f32 to vector<5x1xf32>
    %57 = arith.divf %55, %56 : vector<5x1xf32>
    %58 = vector.broadcast %50 : vector<5x1xf32> to vector<5x32xf32>
    %59 = arith.subf %8, %58 : vector<5x32xf32>
    %cst_69 = arith.constant 9.99999974E-6 : f32
    %60 = vector.broadcast %cst_69 : f32 to vector<5x1xf32>
    %61 = arith.addf %57, %60 : vector<5x1xf32>
    %62 = math.rsqrt %61 : vector<5x1xf32>
    %63 = vector.broadcast %62 : vector<5x1xf32> to vector<5x32xf32>
    %64 = arith.mulf %59, %63 : vector<5x32xf32>
    %65 = vector.broadcast %16 : vector<1x32xf32> to vector<5x32xf32>
    %66 = arith.mulf %64, %65 : vector<5x32xf32>
    %67 = vector.broadcast %18 : vector<1x32xf32> to vector<5x32xf32>
    %68 = arith.addf %66, %67 : vector<5x32xf32>
    %cst_70 = arith.constant dense<0.000000e+00> : vector<5xf32>
    %69 = vector.multi_reduction <add>, %14, %cst_70 [1] : vector<5x32xf32> to vector<5xf32>
    %70 = vector.shape_cast %69 : vector<5xf32> to vector<5x1xf32>
    %cst_71 = arith.constant 3.200000e+01 : f32
    %71 = vector.broadcast %cst_71 : f32 to vector<5x1xf32>
    %72 = arith.divf %70, %71 : vector<5x1xf32>
    %73 = vector.broadcast %72 : vector<5x1xf32> to vector<5x32xf32>
    %74 = arith.subf %14, %73 : vector<5x32xf32>
    %75 = arith.mulf %74, %74 : vector<5x32xf32>
    %cst_72 = arith.constant dense<0.000000e+00> : vector<5xf32>
    %76 = vector.multi_reduction <add>, %75, %cst_72 [1] : vector<5x32xf32> to vector<5xf32>
    %77 = vector.shape_cast %76 : vector<5xf32> to vector<5x1xf32>
    %cst_73 = arith.constant 3.200000e+01 : f32
    %78 = vector.broadcast %cst_73 : f32 to vector<5x1xf32>
    %79 = arith.divf %77, %78 : vector<5x1xf32>
    %80 = vector.broadcast %72 : vector<5x1xf32> to vector<5x32xf32>
    %81 = arith.subf %14, %80 : vector<5x32xf32>
    %cst_74 = arith.constant 9.99999974E-6 : f32
    %82 = vector.broadcast %cst_74 : f32 to vector<5x1xf32>
    %83 = arith.addf %79, %82 : vector<5x1xf32>
    %84 = math.rsqrt %83 : vector<5x1xf32>
    %85 = vector.broadcast %84 : vector<5x1xf32> to vector<5x32xf32>
    %86 = arith.mulf %81, %85 : vector<5x32xf32>
    %87 = vector.broadcast %16 : vector<1x32xf32> to vector<5x32xf32>
    %88 = arith.mulf %86, %87 : vector<5x32xf32>
    %89 = vector.broadcast %18 : vector<1x32xf32> to vector<5x32xf32>
    %90 = arith.addf %88, %89 : vector<5x32xf32>
    %cst_75 = arith.constant dense<0.000000e+00> : vector<5x32xf32>
    %91 = tpu.matmul %68, %20, %cst_75 {dimension_numbers = #tpu.dot_dimension_numbers<[1], [0], [0], [1], [0, 0, 1, 1], [], []>} : vector<5x32xf32>, vector<32x32xf32>, vector<5x32xf32> -> vector<5x32xf32>
    %92 = vector.broadcast %26 : vector<1x32xf32> to vector<5x32xf32>
    %93 = arith.addf %91, %92 : vector<5x32xf32>
    %cst_76 = arith.constant dense<0.000000e+00> : vector<5x32xf32>
    %94 = tpu.matmul %90, %20, %cst_76 {dimension_numbers = #tpu.dot_dimension_numbers<[1], [0], [0], [1], [0, 0, 1, 1], [], []>} : vector<5x32xf32>, vector<32x32xf32>, vector<5x32xf32> -> vector<5x32xf32>
    %95 = vector.broadcast %26 : vector<1x32xf32> to vector<5x32xf32>
    %96 = arith.addf %94, %95 : vector<5x32xf32>
    %cst_77 = arith.constant dense<0.000000e+00> : vector<5x32xf32>
    %97 = tpu.matmul %68, %22, %cst_77 {dimension_numbers = #tpu.dot_dimension_numbers<[1], [0], [0], [1], [0, 0, 1, 1], [], []>} : vector<5x32xf32>, vector<32x32xf32>, vector<5x32xf32> -> vector<5x32xf32>
    %98 = vector.broadcast %28 : vector<1x32xf32> to vector<5x32xf32>
    %99 = arith.addf %97, %98 : vector<5x32xf32>
    %cst_78 = arith.constant dense<0.000000e+00> : vector<5x32xf32>
    %100 = tpu.matmul %90, %22, %cst_78 {dimension_numbers = #tpu.dot_dimension_numbers<[1], [0], [0], [1], [0, 0, 1, 1], [], []>} : vector<5x32xf32>, vector<32x32xf32>, vector<5x32xf32> -> vector<5x32xf32>
    %101 = vector.broadcast %28 : vector<1x32xf32> to vector<5x32xf32>
    %102 = arith.addf %100, %101 : vector<5x32xf32>
    %cst_79 = arith.constant dense<0.000000e+00> : vector<5x32xf32>
    %103 = tpu.matmul %68, %24, %cst_79 {dimension_numbers = #tpu.dot_dimension_numbers<[1], [0], [0], [1], [0, 0, 1, 1], [], []>} : vector<5x32xf32>, vector<32x32xf32>, vector<5x32xf32> -> vector<5x32xf32>
    %104 = vector.broadcast %30 : vector<1x32xf32> to vector<5x32xf32>
    %105 = arith.addf %103, %104 : vector<5x32xf32>
    %cst_80 = arith.constant dense<0.000000e+00> : vector<5x32xf32>
    %106 = tpu.matmul %90, %24, %cst_80 {dimension_numbers = #tpu.dot_dimension_numbers<[1], [0], [0], [1], [0, 0, 1, 1], [], []>} : vector<5x32xf32>, vector<32x32xf32>, vector<5x32xf32> -> vector<5x32xf32>
    %107 = vector.broadcast %30 : vector<1x32xf32> to vector<5x32xf32>
    %108 = arith.addf %106, %107 : vector<5x32xf32>
    %109 = arith.mulf %93, %99 : vector<5x32xf32>
    %cst_81 = arith.constant dense<0.000000e+00> : vector<5x4xf32>
    %110 = tpu.matmul %109, %0, %cst_81 {dimension_numbers = #tpu.dot_dimension_numbers<[1], [0], [0], [1], [0, 0, 1, 1], [], []>} : vector<5x32xf32>, vector<32x4xf32>, vector<5x4xf32> -> vector<5x4xf32>
    %cst_82 = arith.constant 0.353553385 : f32
    %111 = vector.broadcast %cst_82 : f32 to vector<5x4xf32>
    %112 = arith.mulf %110, %111 : vector<5x4xf32>
    %113 = arith.mulf %93, %102 : vector<5x32xf32>
    %cst_83 = arith.constant dense<0.000000e+00> : vector<5x4xf32>
    %114 = tpu.matmul %113, %0, %cst_83 {dimension_numbers = #tpu.dot_dimension_numbers<[1], [0], [0], [1], [0, 0, 1, 1], [], []>} : vector<5x32xf32>, vector<32x4xf32>, vector<5x4xf32> -> vector<5x4xf32>
    %cst_84 = arith.constant 0.353553385 : f32
    %115 = vector.broadcast %cst_84 : f32 to vector<5x4xf32>
    %116 = arith.mulf %114, %115 : vector<5x4xf32>
    %117 = arith.maximumf %112, %116 : vector<5x4xf32>
    %118 = arith.subf %112, %117 : vector<5x4xf32>
    %119 = math.exp %118 : vector<5x4xf32>
    %120 = arith.subf %116, %117 : vector<5x4xf32>
    %121 = math.exp %120 : vector<5x4xf32>
    %122 = arith.addf %119, %121 : vector<5x4xf32>
    %123 = tpu.reciprocal %122 {approx = true} : vector<5x4xf32> -> vector<5x4xf32>
    %124 = arith.mulf %119, %123 : vector<5x4xf32>
    %cst_85 = arith.constant dense<0.000000e+00> : vector<5x32xf32>
    %125 = tpu.matmul %124, %1, %cst_85 {dimension_numbers = #tpu.dot_dimension_numbers<[1], [0], [0], [1], [0, 0, 1, 1], [], []>} : vector<5x4xf32>, vector<4x32xf32>, vector<5x32xf32> -> vector<5x32xf32>
    %126 = arith.mulf %125, %105 : vector<5x32xf32>
    %127 = arith.mulf %121, %123 : vector<5x4xf32>
    %cst_86 = arith.constant dense<0.000000e+00> : vector<5x32xf32>
    %128 = tpu.matmul %127, %1, %cst_86 {dimension_numbers = #tpu.dot_dimension_numbers<[1], [0], [0], [1], [0, 0, 1, 1], [], []>} : vector<5x4xf32>, vector<4x32xf32>, vector<5x32xf32> -> vector<5x32xf32>
    %129 = arith.mulf %128, %108 : vector<5x32xf32>
    %130 = arith.addf %126, %129 : vector<5x32xf32>
    %131 = arith.mulf %96, %99 : vector<5x32xf32>
    %cst_87 = arith.constant dense<0.000000e+00> : vector<5x4xf32>
    %132 = tpu.matmul %131, %0, %cst_87 {dimension_numbers = #tpu.dot_dimension_numbers<[1], [0], [0], [1], [0, 0, 1, 1], [], []>} : vector<5x32xf32>, vector<32x4xf32>, vector<5x4xf32> -> vector<5x4xf32>
    %cst_88 = arith.constant 0.353553385 : f32
    %133 = vector.broadcast %cst_88 : f32 to vector<5x4xf32>
    %134 = arith.mulf %132, %133 : vector<5x4xf32>
    %135 = arith.mulf %96, %102 : vector<5x32xf32>
    %cst_89 = arith.constant dense<0.000000e+00> : vector<5x4xf32>
    %136 = tpu.matmul %135, %0, %cst_89 {dimension_numbers = #tpu.dot_dimension_numbers<[1], [0], [0], [1], [0, 0, 1, 1], [], []>} : vector<5x32xf32>, vector<32x4xf32>, vector<5x4xf32> -> vector<5x4xf32>
    %cst_90 = arith.constant 0.353553385 : f32
    %137 = vector.broadcast %cst_90 : f32 to vector<5x4xf32>
    %138 = arith.mulf %136, %137 : vector<5x4xf32>
    %139 = arith.maximumf %134, %138 : vector<5x4xf32>
    %140 = arith.subf %134, %139 : vector<5x4xf32>
    %141 = math.exp %140 : vector<5x4xf32>
    %142 = arith.subf %138, %139 : vector<5x4xf32>
    %143 = math.exp %142 : vector<5x4xf32>
    %144 = arith.addf %141, %143 : vector<5x4xf32>
    %145 = tpu.reciprocal %144 {approx = true} : vector<5x4xf32> -> vector<5x4xf32>
    %146 = arith.mulf %141, %145 : vector<5x4xf32>
    %cst_91 = arith.constant dense<0.000000e+00> : vector<5x32xf32>
    %147 = tpu.matmul %146, %1, %cst_91 {dimension_numbers = #tpu.dot_dimension_numbers<[1], [0], [0], [1], [0, 0, 1, 1], [], []>} : vector<5x4xf32>, vector<4x32xf32>, vector<5x32xf32> -> vector<5x32xf32>
    %148 = arith.mulf %147, %105 : vector<5x32xf32>
    %149 = arith.mulf %143, %145 : vector<5x4xf32>
    %cst_92 = arith.constant dense<0.000000e+00> : vector<5x32xf32>
    %150 = tpu.matmul %149, %1, %cst_92 {dimension_numbers = #tpu.dot_dimension_numbers<[1], [0], [0], [1], [0, 0, 1, 1], [], []>} : vector<5x4xf32>, vector<4x32xf32>, vector<5x32xf32> -> vector<5x32xf32>
    %151 = arith.mulf %150, %108 : vector<5x32xf32>
    %152 = arith.addf %148, %151 : vector<5x32xf32>
    %cst_93 = arith.constant dense<0.000000e+00> : vector<5x32xf32>
    %153 = tpu.matmul %130, %32, %cst_93 {dimension_numbers = #tpu.dot_dimension_numbers<[1], [0], [0], [1], [0, 0, 1, 1], [], []>} : vector<5x32xf32>, vector<32x32xf32>, vector<5x32xf32> -> vector<5x32xf32>
    %154 = arith.addf %8, %153 : vector<5x32xf32>
    %155 = vector.broadcast %34 : vector<1x32xf32> to vector<5x32xf32>
    %156 = arith.addf %154, %155 : vector<5x32xf32>
    %cst_94 = arith.constant dense<0.000000e+00> : vector<5x32xf32>
    %157 = tpu.matmul %152, %32, %cst_94 {dimension_numbers = #tpu.dot_dimension_numbers<[1], [0], [0], [1], [0, 0, 1, 1], [], []>} : vector<5x32xf32>, vector<32x32xf32>, vector<5x32xf32> -> vector<5x32xf32>
    %158 = arith.addf %14, %157 : vector<5x32xf32>
    %159 = vector.broadcast %34 : vector<1x32xf32> to vector<5x32xf32>
    %160 = arith.addf %158, %159 : vector<5x32xf32>
    %cst_95 = arith.constant dense<0.000000e+00> : vector<5xf32>
    %161 = vector.multi_reduction <add>, %156, %cst_95 [1] : vector<5x32xf32> to vector<5xf32>
    %162 = vector.shape_cast %161 : vector<5xf32> to vector<5x1xf32>
    %cst_96 = arith.constant 3.200000e+01 : f32
    %163 = vector.broadcast %cst_96 : f32 to vector<5x1xf32>
    %164 = arith.divf %162, %163 : vector<5x1xf32>
    %165 = vector.broadcast %164 : vector<5x1xf32> to vector<5x32xf32>
    %166 = arith.subf %156, %165 : vector<5x32xf32>
    %167 = arith.mulf %166, %166 : vector<5x32xf32>
    %cst_97 = arith.constant dense<0.000000e+00> : vector<5xf32>
    %168 = vector.multi_reduction <add>, %167, %cst_97 [1] : vector<5x32xf32> to vector<5xf32>
    %169 = vector.shape_cast %168 : vector<5xf32> to vector<5x1xf32>
    %cst_98 = arith.constant 3.200000e+01 : f32
    %170 = vector.broadcast %cst_98 : f32 to vector<5x1xf32>
    %171 = arith.divf %169, %170 : vector<5x1xf32>
    %172 = vector.broadcast %164 : vector<5x1xf32> to vector<5x32xf32>
    %173 = arith.subf %156, %172 : vector<5x32xf32>
    %cst_99 = arith.constant 9.99999974E-6 : f32
    %174 = vector.broadcast %cst_99 : f32 to vector<5x1xf32>
    %175 = arith.addf %171, %174 : vector<5x1xf32>
    %176 = math.rsqrt %175 : vector<5x1xf32>
    %177 = vector.broadcast %176 : vector<5x1xf32> to vector<5x32xf32>
    %178 = arith.mulf %173, %177 : vector<5x32xf32>
    %179 = vector.broadcast %36 : vector<1x32xf32> to vector<5x32xf32>
    %180 = arith.mulf %178, %179 : vector<5x32xf32>
    %181 = vector.broadcast %38 : vector<1x32xf32> to vector<5x32xf32>
    %182 = arith.addf %180, %181 : vector<5x32xf32>
    %cst_100 = arith.constant dense<0.000000e+00> : vector<5xf32>
    %183 = vector.multi_reduction <add>, %160, %cst_100 [1] : vector<5x32xf32> to vector<5xf32>
    %184 = vector.shape_cast %183 : vector<5xf32> to vector<5x1xf32>
    %cst_101 = arith.constant 3.200000e+01 : f32
    %185 = vector.broadcast %cst_101 : f32 to vector<5x1xf32>
    %186 = arith.divf %184, %185 : vector<5x1xf32>
    %187 = vector.broadcast %186 : vector<5x1xf32> to vector<5x32xf32>
    %188 = arith.subf %160, %187 : vector<5x32xf32>
    %189 = arith.mulf %188, %188 : vector<5x32xf32>
    %cst_102 = arith.constant dense<0.000000e+00> : vector<5xf32>
    %190 = vector.multi_reduction <add>, %189, %cst_102 [1] : vector<5x32xf32> to vector<5xf32>
    %191 = vector.shape_cast %190 : vector<5xf32> to vector<5x1xf32>
    %cst_103 = arith.constant 3.200000e+01 : f32
    %192 = vector.broadcast %cst_103 : f32 to vector<5x1xf32>
    %193 = arith.divf %191, %192 : vector<5x1xf32>
    %194 = vector.broadcast %186 : vector<5x1xf32> to vector<5x32xf32>
    %195 = arith.subf %160, %194 : vector<5x32xf32>
    %cst_104 = arith.constant 9.99999974E-6 : f32
    %196 = vector.broadcast %cst_104 : f32 to vector<5x1xf32>
    %197 = arith.addf %193, %196 : vector<5x1xf32>
    %198 = math.rsqrt %197 : vector<5x1xf32>
    %199 = vector.broadcast %198 : vector<5x1xf32> to vector<5x32xf32>
    %200 = arith.mulf %195, %199 : vector<5x32xf32>
    %201 = vector.broadcast %36 : vector<1x32xf32> to vector<5x32xf32>
    %202 = arith.mulf %200, %201 : vector<5x32xf32>
    %203 = vector.broadcast %38 : vector<1x32xf32> to vector<5x32xf32>
    %204 = arith.addf %202, %203 : vector<5x32xf32>
    %cst_105 = arith.constant dense<0.000000e+00> : vector<5x64xf32>
    %205 = tpu.matmul %182, %40, %cst_105 {dimension_numbers = #tpu.dot_dimension_numbers<[1], [0], [0], [1], [0, 0, 1, 1], [], []>} : vector<5x32xf32>, vector<32x64xf32>, vector<5x64xf32> -> vector<5x64xf32>
    %206 = vector.broadcast %42 : vector<1x64xf32> to vector<5x64xf32>
    %207 = arith.addf %205, %206 : vector<5x64xf32>
    %cst_106 = arith.constant 5.000000e-01 : f32
    %208 = vector.broadcast %cst_106 : f32 to vector<5x64xf32>
    %209 = arith.mulf %208, %207 : vector<5x64xf32>
    %cst_107 = arith.constant 0.707106769 : f32
    %210 = vector.broadcast %cst_107 : f32 to vector<5x64xf32>
    %211 = arith.mulf %207, %210 : vector<5x64xf32>
    %cst_108 = arith.constant 0.000000e+00 : f32
    %212 = vector.broadcast %cst_108 : f32 to vector<5x64xf32>
    %213 = arith.cmpf oge, %211, %212 : vector<5x64xf32>
    %cst_109 = arith.constant 1.000000e+00 : f32
    %cst_110 = arith.constant -1.000000e+00 : f32
    %214 = vector.broadcast %cst_109 : f32 to vector<5x64xf32>
    %215 = vector.broadcast %cst_110 : f32 to vector<5x64xf32>
    %216 = arith.select %213, %214, %215 : vector<5x64xi1>, vector<5x64xf32>
    %217 = math.absf %211 : vector<5x64xf32>
    %cst_111 = arith.constant 0.327591091 : f32
    %218 = vector.broadcast %cst_111 : f32 to vector<5x64xf32>
    %219 = arith.mulf %218, %217 : vector<5x64xf32>
    %cst_112 = arith.constant 1.000000e+00 : f32
    %220 = vector.broadcast %cst_112 : f32 to vector<5x64xf32>
    %221 = arith.addf %220, %219 : vector<5x64xf32>
    %cst_113 = arith.constant 1.000000e+00 : f32
    %222 = vector.broadcast %cst_113 : f32 to vector<5x64xf32>
    %223 = arith.divf %222, %221 : vector<5x64xf32>
    %cst_114 = arith.constant 1.06140542 : f32
    %224 = vector.broadcast %cst_114 : f32 to vector<5x64xf32>
    %225 = arith.mulf %224, %223 : vector<5x64xf32>
    %cst_115 = arith.constant -1.45315206 : f32
    %226 = vector.broadcast %cst_115 : f32 to vector<5x64xf32>
    %227 = arith.addf %225, %226 : vector<5x64xf32>
    %228 = arith.mulf %227, %223 : vector<5x64xf32>
    %cst_116 = arith.constant 1.42141378 : f32
    %229 = vector.broadcast %cst_116 : f32 to vector<5x64xf32>
    %230 = arith.addf %228, %229 : vector<5x64xf32>
    %231 = arith.mulf %230, %223 : vector<5x64xf32>
    %cst_117 = arith.constant -0.284496725 : f32
    %232 = vector.broadcast %cst_117 : f32 to vector<5x64xf32>
    %233 = arith.addf %231, %232 : vector<5x64xf32>
    %234 = arith.mulf %233, %223 : vector<5x64xf32>
    %cst_118 = arith.constant 0.254829586 : f32
    %235 = vector.broadcast %cst_118 : f32 to vector<5x64xf32>
    %236 = arith.addf %234, %235 : vector<5x64xf32>
    %237 = arith.mulf %236, %223 : vector<5x64xf32>
    %cst_119 = arith.constant 0.000000e+00 : f32
    %238 = vector.broadcast %cst_119 : f32 to vector<5x64xf32>
    %239 = arith.subf %238, %217 : vector<5x64xf32>
    %240 = arith.mulf %239, %217 : vector<5x64xf32>
    %241 = math.exp %240 : vector<5x64xf32>
    %242 = arith.mulf %237, %241 : vector<5x64xf32>
    %cst_120 = arith.constant 1.000000e+00 : f32
    %243 = vector.broadcast %cst_120 : f32 to vector<5x64xf32>
    %244 = arith.subf %243, %242 : vector<5x64xf32>
    %245 = arith.mulf %216, %244 : vector<5x64xf32>
    %cst_121 = arith.constant 1.000000e+00 : f32
    %246 = vector.broadcast %cst_121 : f32 to vector<5x64xf32>
    %247 = arith.addf %246, %245 : vector<5x64xf32>
    %248 = arith.mulf %209, %247 : vector<5x64xf32>
    %cst_122 = arith.constant dense<0.000000e+00> : vector<5x64xf32>
    %249 = tpu.matmul %204, %40, %cst_122 {dimension_numbers = #tpu.dot_dimension_numbers<[1], [0], [0], [1], [0, 0, 1, 1], [], []>} : vector<5x32xf32>, vector<32x64xf32>, vector<5x64xf32> -> vector<5x64xf32>
    %250 = vector.broadcast %42 : vector<1x64xf32> to vector<5x64xf32>
    %251 = arith.addf %249, %250 : vector<5x64xf32>
    %cst_123 = arith.constant 5.000000e-01 : f32
    %252 = vector.broadcast %cst_123 : f32 to vector<5x64xf32>
    %253 = arith.mulf %252, %251 : vector<5x64xf32>
    %cst_124 = arith.constant 0.707106769 : f32
    %254 = vector.broadcast %cst_124 : f32 to vector<5x64xf32>
    %255 = arith.mulf %251, %254 : vector<5x64xf32>
    %cst_125 = arith.constant 0.000000e+00 : f32
    %256 = vector.broadcast %cst_125 : f32 to vector<5x64xf32>
    %257 = arith.cmpf oge, %255, %256 : vector<5x64xf32>
    %cst_126 = arith.constant 1.000000e+00 : f32
    %cst_127 = arith.constant -1.000000e+00 : f32
    %258 = vector.broadcast %cst_126 : f32 to vector<5x64xf32>
    %259 = vector.broadcast %cst_127 : f32 to vector<5x64xf32>
    %260 = arith.select %257, %258, %259 : vector<5x64xi1>, vector<5x64xf32>
    %261 = math.absf %255 : vector<5x64xf32>
    %cst_128 = arith.constant 0.327591091 : f32
    %262 = vector.broadcast %cst_128 : f32 to vector<5x64xf32>
    %263 = arith.mulf %262, %261 : vector<5x64xf32>
    %cst_129 = arith.constant 1.000000e+00 : f32
    %264 = vector.broadcast %cst_129 : f32 to vector<5x64xf32>
    %265 = arith.addf %264, %263 : vector<5x64xf32>
    %cst_130 = arith.constant 1.000000e+00 : f32
    %266 = vector.broadcast %cst_130 : f32 to vector<5x64xf32>
    %267 = arith.divf %266, %265 : vector<5x64xf32>
    %cst_131 = arith.constant 1.06140542 : f32
    %268 = vector.broadcast %cst_131 : f32 to vector<5x64xf32>
    %269 = arith.mulf %268, %267 : vector<5x64xf32>
    %cst_132 = arith.constant -1.45315206 : f32
    %270 = vector.broadcast %cst_132 : f32 to vector<5x64xf32>
    %271 = arith.addf %269, %270 : vector<5x64xf32>
    %272 = arith.mulf %271, %267 : vector<5x64xf32>
    %cst_133 = arith.constant 1.42141378 : f32
    %273 = vector.broadcast %cst_133 : f32 to vector<5x64xf32>
    %274 = arith.addf %272, %273 : vector<5x64xf32>
    %275 = arith.mulf %274, %267 : vector<5x64xf32>
    %cst_134 = arith.constant -0.284496725 : f32
    %276 = vector.broadcast %cst_134 : f32 to vector<5x64xf32>
    %277 = arith.addf %275, %276 : vector<5x64xf32>
    %278 = arith.mulf %277, %267 : vector<5x64xf32>
    %cst_135 = arith.constant 0.254829586 : f32
    %279 = vector.broadcast %cst_135 : f32 to vector<5x64xf32>
    %280 = arith.addf %278, %279 : vector<5x64xf32>
    %281 = arith.mulf %280, %267 : vector<5x64xf32>
    %cst_136 = arith.constant 0.000000e+00 : f32
    %282 = vector.broadcast %cst_136 : f32 to vector<5x64xf32>
    %283 = arith.subf %282, %261 : vector<5x64xf32>
    %284 = arith.mulf %283, %261 : vector<5x64xf32>
    %285 = math.exp %284 : vector<5x64xf32>
    %286 = arith.mulf %281, %285 : vector<5x64xf32>
    %cst_137 = arith.constant 1.000000e+00 : f32
    %287 = vector.broadcast %cst_137 : f32 to vector<5x64xf32>
    %288 = arith.subf %287, %286 : vector<5x64xf32>
    %289 = arith.mulf %260, %288 : vector<5x64xf32>
    %cst_138 = arith.constant 1.000000e+00 : f32
    %290 = vector.broadcast %cst_138 : f32 to vector<5x64xf32>
    %291 = arith.addf %290, %289 : vector<5x64xf32>
    %292 = arith.mulf %253, %291 : vector<5x64xf32>
    %cst_139 = arith.constant dense<0.000000e+00> : vector<5x32xf32>
    %293 = tpu.matmul %248, %44, %cst_139 {dimension_numbers = #tpu.dot_dimension_numbers<[1], [0], [0], [1], [0, 0, 1, 1], [], []>} : vector<5x64xf32>, vector<64x32xf32>, vector<5x32xf32> -> vector<5x32xf32>
    %294 = arith.addf %156, %293 : vector<5x32xf32>
    %295 = vector.broadcast %46 : vector<1x32xf32> to vector<5x32xf32>
    %296 = arith.addf %294, %295 : vector<5x32xf32>
    %cst_140 = arith.constant dense<0.000000e+00> : vector<5x32xf32>
    %297 = tpu.matmul %292, %44, %cst_140 {dimension_numbers = #tpu.dot_dimension_numbers<[1], [0], [0], [1], [0, 0, 1, 1], [], []>} : vector<5x64xf32>, vector<64x32xf32>, vector<5x32xf32> -> vector<5x32xf32>
    %298 = arith.addf %160, %297 : vector<5x32xf32>
    %299 = vector.broadcast %46 : vector<1x32xf32> to vector<5x32xf32>
    %300 = arith.addf %298, %299 : vector<5x32xf32>
    %c1_141 = arith.constant 1 : index
    %c0_142 = arith.constant 0 : index
    %c0_143 = arith.constant 0 : index
    %301 = vector.load %arg5[%c1_141, %c0_142, %c0_143] : memref<2x1x32xf32, #tpu.memory_space<vmem>>, vector<1x1x32xf32>
    %302 = vector.shape_cast %301 : vector<1x1x32xf32> to vector<1x32xf32>
    %c1_144 = arith.constant 1 : index
    %c0_145 = arith.constant 0 : index
    %c0_146 = arith.constant 0 : index
    %303 = vector.load %arg6[%c1_144, %c0_145, %c0_146] : memref<2x1x32xf32, #tpu.memory_space<vmem>>, vector<1x1x32xf32>
    %304 = vector.shape_cast %303 : vector<1x1x32xf32> to vector<1x32xf32>
    %c1_147 = arith.constant 1 : index
    %c0_148 = arith.constant 0 : index
    %c0_149 = arith.constant 0 : index
    %305 = vector.load %arg7[%c1_147, %c0_148, %c0_149] : memref<2x32x32xf32, #tpu.memory_space<vmem>>, vector<1x32x32xf32>
    %306 = vector.shape_cast %305 : vector<1x32x32xf32> to vector<32x32xf32>
    %c1_150 = arith.constant 1 : index
    %c0_151 = arith.constant 0 : index
    %c0_152 = arith.constant 0 : index
    %307 = vector.load %arg8[%c1_150, %c0_151, %c0_152] : memref<2x32x32xf32, #tpu.memory_space<vmem>>, vector<1x32x32xf32>
    %308 = vector.shape_cast %307 : vector<1x32x32xf32> to vector<32x32xf32>
    %c1_153 = arith.constant 1 : index
    %c0_154 = arith.constant 0 : index
    %c0_155 = arith.constant 0 : index
    %309 = vector.load %arg9[%c1_153, %c0_154, %c0_155] : memref<2x32x32xf32, #tpu.memory_space<vmem>>, vector<1x32x32xf32>
    %310 = vector.shape_cast %309 : vector<1x32x32xf32> to vector<32x32xf32>
    %c1_156 = arith.constant 1 : index
    %c0_157 = arith.constant 0 : index
    %c0_158 = arith.constant 0 : index
    %311 = vector.load %arg10[%c1_156, %c0_157, %c0_158] : memref<2x1x32xf32, #tpu.memory_space<vmem>>, vector<1x1x32xf32>
    %312 = vector.shape_cast %311 : vector<1x1x32xf32> to vector<1x32xf32>
    %c1_159 = arith.constant 1 : index
    %c0_160 = arith.constant 0 : index
    %c0_161 = arith.constant 0 : index
    %313 = vector.load %arg11[%c1_159, %c0_160, %c0_161] : memref<2x1x32xf32, #tpu.memory_space<vmem>>, vector<1x1x32xf32>
    %314 = vector.shape_cast %313 : vector<1x1x32xf32> to vector<1x32xf32>
    %c1_162 = arith.constant 1 : index
    %c0_163 = arith.constant 0 : index
    %c0_164 = arith.constant 0 : index
    %315 = vector.load %arg12[%c1_162, %c0_163, %c0_164] : memref<2x1x32xf32, #tpu.memory_space<vmem>>, vector<1x1x32xf32>
    %316 = vector.shape_cast %315 : vector<1x1x32xf32> to vector<1x32xf32>
    %c1_165 = arith.constant 1 : index
    %c0_166 = arith.constant 0 : index
    %c0_167 = arith.constant 0 : index
    %317 = vector.load %arg13[%c1_165, %c0_166, %c0_167] : memref<2x32x32xf32, #tpu.memory_space<vmem>>, vector<1x32x32xf32>
    %318 = vector.shape_cast %317 : vector<1x32x32xf32> to vector<32x32xf32>
    %c1_168 = arith.constant 1 : index
    %c0_169 = arith.constant 0 : index
    %c0_170 = arith.constant 0 : index
    %319 = vector.load %arg14[%c1_168, %c0_169, %c0_170] : memref<2x1x32xf32, #tpu.memory_space<vmem>>, vector<1x1x32xf32>
    %320 = vector.shape_cast %319 : vector<1x1x32xf32> to vector<1x32xf32>
    %c1_171 = arith.constant 1 : index
    %c0_172 = arith.constant 0 : index
    %c0_173 = arith.constant 0 : index
    %321 = vector.load %arg15[%c1_171, %c0_172, %c0_173] : memref<2x1x32xf32, #tpu.memory_space<vmem>>, vector<1x1x32xf32>
    %322 = vector.shape_cast %321 : vector<1x1x32xf32> to vector<1x32xf32>
    %c1_174 = arith.constant 1 : index
    %c0_175 = arith.constant 0 : index
    %c0_176 = arith.constant 0 : index
    %323 = vector.load %arg16[%c1_174, %c0_175, %c0_176] : memref<2x1x32xf32, #tpu.memory_space<vmem>>, vector<1x1x32xf32>
    %324 = vector.shape_cast %323 : vector<1x1x32xf32> to vector<1x32xf32>
    %c1_177 = arith.constant 1 : index
    %c0_178 = arith.constant 0 : index
    %c0_179 = arith.constant 0 : index
    %325 = vector.load %arg17[%c1_177, %c0_178, %c0_179] : memref<2x32x64xf32, #tpu.memory_space<vmem>>, vector<1x32x64xf32>
    %326 = vector.shape_cast %325 : vector<1x32x64xf32> to vector<32x64xf32>
    %c1_180 = arith.constant 1 : index
    %c0_181 = arith.constant 0 : index
    %c0_182 = arith.constant 0 : index
    %327 = vector.load %arg18[%c1_180, %c0_181, %c0_182] : memref<2x1x64xf32, #tpu.memory_space<vmem>>, vector<1x1x64xf32>
    %328 = vector.shape_cast %327 : vector<1x1x64xf32> to vector<1x64xf32>
    %c1_183 = arith.constant 1 : index
    %c0_184 = arith.constant 0 : index
    %c0_185 = arith.constant 0 : index
    %329 = vector.load %arg19[%c1_183, %c0_184, %c0_185] : memref<2x64x32xf32, #tpu.memory_space<vmem>>, vector<1x64x32xf32>
    %330 = vector.shape_cast %329 : vector<1x64x32xf32> to vector<64x32xf32>
    %c1_186 = arith.constant 1 : index
    %c0_187 = arith.constant 0 : index
    %c0_188 = arith.constant 0 : index
    %331 = vector.load %arg20[%c1_186, %c0_187, %c0_188] : memref<2x1x32xf32, #tpu.memory_space<vmem>>, vector<1x1x32xf32>
    %332 = vector.shape_cast %331 : vector<1x1x32xf32> to vector<1x32xf32>
    %cst_189 = arith.constant dense<0.000000e+00> : vector<5xf32>
    %333 = vector.multi_reduction <add>, %296, %cst_189 [1] : vector<5x32xf32> to vector<5xf32>
    %334 = vector.shape_cast %333 : vector<5xf32> to vector<5x1xf32>
    %cst_190 = arith.constant 3.200000e+01 : f32
    %335 = vector.broadcast %cst_190 : f32 to vector<5x1xf32>
    %336 = arith.divf %334, %335 : vector<5x1xf32>
    %337 = vector.broadcast %336 : vector<5x1xf32> to vector<5x32xf32>
    %338 = arith.subf %296, %337 : vector<5x32xf32>
    %339 = arith.mulf %338, %338 : vector<5x32xf32>
    %cst_191 = arith.constant dense<0.000000e+00> : vector<5xf32>
    %340 = vector.multi_reduction <add>, %339, %cst_191 [1] : vector<5x32xf32> to vector<5xf32>
    %341 = vector.shape_cast %340 : vector<5xf32> to vector<5x1xf32>
    %cst_192 = arith.constant 3.200000e+01 : f32
    %342 = vector.broadcast %cst_192 : f32 to vector<5x1xf32>
    %343 = arith.divf %341, %342 : vector<5x1xf32>
    %344 = vector.broadcast %336 : vector<5x1xf32> to vector<5x32xf32>
    %345 = arith.subf %296, %344 : vector<5x32xf32>
    %cst_193 = arith.constant 9.99999974E-6 : f32
    %346 = vector.broadcast %cst_193 : f32 to vector<5x1xf32>
    %347 = arith.addf %343, %346 : vector<5x1xf32>
    %348 = math.rsqrt %347 : vector<5x1xf32>
    %349 = vector.broadcast %348 : vector<5x1xf32> to vector<5x32xf32>
    %350 = arith.mulf %345, %349 : vector<5x32xf32>
    %351 = vector.broadcast %302 : vector<1x32xf32> to vector<5x32xf32>
    %352 = arith.mulf %350, %351 : vector<5x32xf32>
    %353 = vector.broadcast %304 : vector<1x32xf32> to vector<5x32xf32>
    %354 = arith.addf %352, %353 : vector<5x32xf32>
    %cst_194 = arith.constant dense<0.000000e+00> : vector<5xf32>
    %355 = vector.multi_reduction <add>, %300, %cst_194 [1] : vector<5x32xf32> to vector<5xf32>
    %356 = vector.shape_cast %355 : vector<5xf32> to vector<5x1xf32>
    %cst_195 = arith.constant 3.200000e+01 : f32
    %357 = vector.broadcast %cst_195 : f32 to vector<5x1xf32>
    %358 = arith.divf %356, %357 : vector<5x1xf32>
    %359 = vector.broadcast %358 : vector<5x1xf32> to vector<5x32xf32>
    %360 = arith.subf %300, %359 : vector<5x32xf32>
    %361 = arith.mulf %360, %360 : vector<5x32xf32>
    %cst_196 = arith.constant dense<0.000000e+00> : vector<5xf32>
    %362 = vector.multi_reduction <add>, %361, %cst_196 [1] : vector<5x32xf32> to vector<5xf32>
    %363 = vector.shape_cast %362 : vector<5xf32> to vector<5x1xf32>
    %cst_197 = arith.constant 3.200000e+01 : f32
    %364 = vector.broadcast %cst_197 : f32 to vector<5x1xf32>
    %365 = arith.divf %363, %364 : vector<5x1xf32>
    %366 = vector.broadcast %358 : vector<5x1xf32> to vector<5x32xf32>
    %367 = arith.subf %300, %366 : vector<5x32xf32>
    %cst_198 = arith.constant 9.99999974E-6 : f32
    %368 = vector.broadcast %cst_198 : f32 to vector<5x1xf32>
    %369 = arith.addf %365, %368 : vector<5x1xf32>
    %370 = math.rsqrt %369 : vector<5x1xf32>
    %371 = vector.broadcast %370 : vector<5x1xf32> to vector<5x32xf32>
    %372 = arith.mulf %367, %371 : vector<5x32xf32>
    %373 = vector.broadcast %302 : vector<1x32xf32> to vector<5x32xf32>
    %374 = arith.mulf %372, %373 : vector<5x32xf32>
    %375 = vector.broadcast %304 : vector<1x32xf32> to vector<5x32xf32>
    %376 = arith.addf %374, %375 : vector<5x32xf32>
    %cst_199 = arith.constant dense<0.000000e+00> : vector<5x32xf32>
    %377 = tpu.matmul %354, %306, %cst_199 {dimension_numbers = #tpu.dot_dimension_numbers<[1], [0], [0], [1], [0, 0, 1, 1], [], []>} : vector<5x32xf32>, vector<32x32xf32>, vector<5x32xf32> -> vector<5x32xf32>
    %378 = vector.broadcast %312 : vector<1x32xf32> to vector<5x32xf32>
    %379 = arith.addf %377, %378 : vector<5x32xf32>
    %cst_200 = arith.constant dense<0.000000e+00> : vector<5x32xf32>
    %380 = tpu.matmul %376, %306, %cst_200 {dimension_numbers = #tpu.dot_dimension_numbers<[1], [0], [0], [1], [0, 0, 1, 1], [], []>} : vector<5x32xf32>, vector<32x32xf32>, vector<5x32xf32> -> vector<5x32xf32>
    %381 = vector.broadcast %312 : vector<1x32xf32> to vector<5x32xf32>
    %382 = arith.addf %380, %381 : vector<5x32xf32>
    %cst_201 = arith.constant dense<0.000000e+00> : vector<5x32xf32>
    %383 = tpu.matmul %354, %308, %cst_201 {dimension_numbers = #tpu.dot_dimension_numbers<[1], [0], [0], [1], [0, 0, 1, 1], [], []>} : vector<5x32xf32>, vector<32x32xf32>, vector<5x32xf32> -> vector<5x32xf32>
    %384 = vector.broadcast %314 : vector<1x32xf32> to vector<5x32xf32>
    %385 = arith.addf %383, %384 : vector<5x32xf32>
    %cst_202 = arith.constant dense<0.000000e+00> : vector<5x32xf32>
    %386 = tpu.matmul %376, %308, %cst_202 {dimension_numbers = #tpu.dot_dimension_numbers<[1], [0], [0], [1], [0, 0, 1, 1], [], []>} : vector<5x32xf32>, vector<32x32xf32>, vector<5x32xf32> -> vector<5x32xf32>
    %387 = vector.broadcast %314 : vector<1x32xf32> to vector<5x32xf32>
    %388 = arith.addf %386, %387 : vector<5x32xf32>
    %cst_203 = arith.constant dense<0.000000e+00> : vector<5x32xf32>
    %389 = tpu.matmul %354, %310, %cst_203 {dimension_numbers = #tpu.dot_dimension_numbers<[1], [0], [0], [1], [0, 0, 1, 1], [], []>} : vector<5x32xf32>, vector<32x32xf32>, vector<5x32xf32> -> vector<5x32xf32>
    %390 = vector.broadcast %316 : vector<1x32xf32> to vector<5x32xf32>
    %391 = arith.addf %389, %390 : vector<5x32xf32>
    %cst_204 = arith.constant dense<0.000000e+00> : vector<5x32xf32>
    %392 = tpu.matmul %376, %310, %cst_204 {dimension_numbers = #tpu.dot_dimension_numbers<[1], [0], [0], [1], [0, 0, 1, 1], [], []>} : vector<5x32xf32>, vector<32x32xf32>, vector<5x32xf32> -> vector<5x32xf32>
    %393 = vector.broadcast %316 : vector<1x32xf32> to vector<5x32xf32>
    %394 = arith.addf %392, %393 : vector<5x32xf32>
    %395 = arith.mulf %379, %385 : vector<5x32xf32>
    %cst_205 = arith.constant dense<0.000000e+00> : vector<5x4xf32>
    %396 = tpu.matmul %395, %0, %cst_205 {dimension_numbers = #tpu.dot_dimension_numbers<[1], [0], [0], [1], [0, 0, 1, 1], [], []>} : vector<5x32xf32>, vector<32x4xf32>, vector<5x4xf32> -> vector<5x4xf32>
    %cst_206 = arith.constant 0.353553385 : f32
    %397 = vector.broadcast %cst_206 : f32 to vector<5x4xf32>
    %398 = arith.mulf %396, %397 : vector<5x4xf32>
    %399 = arith.mulf %379, %388 : vector<5x32xf32>
    %cst_207 = arith.constant dense<0.000000e+00> : vector<5x4xf32>
    %400 = tpu.matmul %399, %0, %cst_207 {dimension_numbers = #tpu.dot_dimension_numbers<[1], [0], [0], [1], [0, 0, 1, 1], [], []>} : vector<5x32xf32>, vector<32x4xf32>, vector<5x4xf32> -> vector<5x4xf32>
    %cst_208 = arith.constant 0.353553385 : f32
    %401 = vector.broadcast %cst_208 : f32 to vector<5x4xf32>
    %402 = arith.mulf %400, %401 : vector<5x4xf32>
    %403 = arith.maximumf %398, %402 : vector<5x4xf32>
    %404 = arith.subf %398, %403 : vector<5x4xf32>
    %405 = math.exp %404 : vector<5x4xf32>
    %406 = arith.subf %402, %403 : vector<5x4xf32>
    %407 = math.exp %406 : vector<5x4xf32>
    %408 = arith.addf %405, %407 : vector<5x4xf32>
    %409 = tpu.reciprocal %408 {approx = true} : vector<5x4xf32> -> vector<5x4xf32>
    %410 = arith.mulf %405, %409 : vector<5x4xf32>
    %cst_209 = arith.constant dense<0.000000e+00> : vector<5x32xf32>
    %411 = tpu.matmul %410, %1, %cst_209 {dimension_numbers = #tpu.dot_dimension_numbers<[1], [0], [0], [1], [0, 0, 1, 1], [], []>} : vector<5x4xf32>, vector<4x32xf32>, vector<5x32xf32> -> vector<5x32xf32>
    %412 = arith.mulf %411, %391 : vector<5x32xf32>
    %413 = arith.mulf %407, %409 : vector<5x4xf32>
    %cst_210 = arith.constant dense<0.000000e+00> : vector<5x32xf32>
    %414 = tpu.matmul %413, %1, %cst_210 {dimension_numbers = #tpu.dot_dimension_numbers<[1], [0], [0], [1], [0, 0, 1, 1], [], []>} : vector<5x4xf32>, vector<4x32xf32>, vector<5x32xf32> -> vector<5x32xf32>
    %415 = arith.mulf %414, %394 : vector<5x32xf32>
    %416 = arith.addf %412, %415 : vector<5x32xf32>
    %417 = arith.mulf %382, %385 : vector<5x32xf32>
    %cst_211 = arith.constant dense<0.000000e+00> : vector<5x4xf32>
    %418 = tpu.matmul %417, %0, %cst_211 {dimension_numbers = #tpu.dot_dimension_numbers<[1], [0], [0], [1], [0, 0, 1, 1], [], []>} : vector<5x32xf32>, vector<32x4xf32>, vector<5x4xf32> -> vector<5x4xf32>
    %cst_212 = arith.constant 0.353553385 : f32
    %419 = vector.broadcast %cst_212 : f32 to vector<5x4xf32>
    %420 = arith.mulf %418, %419 : vector<5x4xf32>
    %421 = arith.mulf %382, %388 : vector<5x32xf32>
    %cst_213 = arith.constant dense<0.000000e+00> : vector<5x4xf32>
    %422 = tpu.matmul %421, %0, %cst_213 {dimension_numbers = #tpu.dot_dimension_numbers<[1], [0], [0], [1], [0, 0, 1, 1], [], []>} : vector<5x32xf32>, vector<32x4xf32>, vector<5x4xf32> -> vector<5x4xf32>
    %cst_214 = arith.constant 0.353553385 : f32
    %423 = vector.broadcast %cst_214 : f32 to vector<5x4xf32>
    %424 = arith.mulf %422, %423 : vector<5x4xf32>
    %425 = arith.maximumf %420, %424 : vector<5x4xf32>
    %426 = arith.subf %420, %425 : vector<5x4xf32>
    %427 = math.exp %426 : vector<5x4xf32>
    %428 = arith.subf %424, %425 : vector<5x4xf32>
    %429 = math.exp %428 : vector<5x4xf32>
    %430 = arith.addf %427, %429 : vector<5x4xf32>
    %431 = tpu.reciprocal %430 {approx = true} : vector<5x4xf32> -> vector<5x4xf32>
    %432 = arith.mulf %427, %431 : vector<5x4xf32>
    %cst_215 = arith.constant dense<0.000000e+00> : vector<5x32xf32>
    %433 = tpu.matmul %432, %1, %cst_215 {dimension_numbers = #tpu.dot_dimension_numbers<[1], [0], [0], [1], [0, 0, 1, 1], [], []>} : vector<5x4xf32>, vector<4x32xf32>, vector<5x32xf32> -> vector<5x32xf32>
    %434 = arith.mulf %433, %391 : vector<5x32xf32>
    %435 = arith.mulf %429, %431 : vector<5x4xf32>
    %cst_216 = arith.constant dense<0.000000e+00> : vector<5x32xf32>
    %436 = tpu.matmul %435, %1, %cst_216 {dimension_numbers = #tpu.dot_dimension_numbers<[1], [0], [0], [1], [0, 0, 1, 1], [], []>} : vector<5x4xf32>, vector<4x32xf32>, vector<5x32xf32> -> vector<5x32xf32>
    %437 = arith.mulf %436, %394 : vector<5x32xf32>
    %438 = arith.addf %434, %437 : vector<5x32xf32>
    %cst_217 = arith.constant dense<0.000000e+00> : vector<5x32xf32>
    %439 = tpu.matmul %416, %318, %cst_217 {dimension_numbers = #tpu.dot_dimension_numbers<[1], [0], [0], [1], [0, 0, 1, 1], [], []>} : vector<5x32xf32>, vector<32x32xf32>, vector<5x32xf32> -> vector<5x32xf32>
    %440 = arith.addf %296, %439 : vector<5x32xf32>
    %441 = vector.broadcast %320 : vector<1x32xf32> to vector<5x32xf32>
    %442 = arith.addf %440, %441 : vector<5x32xf32>
    %cst_218 = arith.constant dense<0.000000e+00> : vector<5x32xf32>
    %443 = tpu.matmul %438, %318, %cst_218 {dimension_numbers = #tpu.dot_dimension_numbers<[1], [0], [0], [1], [0, 0, 1, 1], [], []>} : vector<5x32xf32>, vector<32x32xf32>, vector<5x32xf32> -> vector<5x32xf32>
    %444 = arith.addf %300, %443 : vector<5x32xf32>
    %445 = vector.broadcast %320 : vector<1x32xf32> to vector<5x32xf32>
    %446 = arith.addf %444, %445 : vector<5x32xf32>
    %cst_219 = arith.constant dense<0.000000e+00> : vector<5xf32>
    %447 = vector.multi_reduction <add>, %442, %cst_219 [1] : vector<5x32xf32> to vector<5xf32>
    %448 = vector.shape_cast %447 : vector<5xf32> to vector<5x1xf32>
    %cst_220 = arith.constant 3.200000e+01 : f32
    %449 = vector.broadcast %cst_220 : f32 to vector<5x1xf32>
    %450 = arith.divf %448, %449 : vector<5x1xf32>
    %451 = vector.broadcast %450 : vector<5x1xf32> to vector<5x32xf32>
    %452 = arith.subf %442, %451 : vector<5x32xf32>
    %453 = arith.mulf %452, %452 : vector<5x32xf32>
    %cst_221 = arith.constant dense<0.000000e+00> : vector<5xf32>
    %454 = vector.multi_reduction <add>, %453, %cst_221 [1] : vector<5x32xf32> to vector<5xf32>
    %455 = vector.shape_cast %454 : vector<5xf32> to vector<5x1xf32>
    %cst_222 = arith.constant 3.200000e+01 : f32
    %456 = vector.broadcast %cst_222 : f32 to vector<5x1xf32>
    %457 = arith.divf %455, %456 : vector<5x1xf32>
    %458 = vector.broadcast %450 : vector<5x1xf32> to vector<5x32xf32>
    %459 = arith.subf %442, %458 : vector<5x32xf32>
    %cst_223 = arith.constant 9.99999974E-6 : f32
    %460 = vector.broadcast %cst_223 : f32 to vector<5x1xf32>
    %461 = arith.addf %457, %460 : vector<5x1xf32>
    %462 = math.rsqrt %461 : vector<5x1xf32>
    %463 = vector.broadcast %462 : vector<5x1xf32> to vector<5x32xf32>
    %464 = arith.mulf %459, %463 : vector<5x32xf32>
    %465 = vector.broadcast %322 : vector<1x32xf32> to vector<5x32xf32>
    %466 = arith.mulf %464, %465 : vector<5x32xf32>
    %467 = vector.broadcast %324 : vector<1x32xf32> to vector<5x32xf32>
    %468 = arith.addf %466, %467 : vector<5x32xf32>
    %cst_224 = arith.constant dense<0.000000e+00> : vector<5xf32>
    %469 = vector.multi_reduction <add>, %446, %cst_224 [1] : vector<5x32xf32> to vector<5xf32>
    %470 = vector.shape_cast %469 : vector<5xf32> to vector<5x1xf32>
    %cst_225 = arith.constant 3.200000e+01 : f32
    %471 = vector.broadcast %cst_225 : f32 to vector<5x1xf32>
    %472 = arith.divf %470, %471 : vector<5x1xf32>
    %473 = vector.broadcast %472 : vector<5x1xf32> to vector<5x32xf32>
    %474 = arith.subf %446, %473 : vector<5x32xf32>
    %475 = arith.mulf %474, %474 : vector<5x32xf32>
    %cst_226 = arith.constant dense<0.000000e+00> : vector<5xf32>
    %476 = vector.multi_reduction <add>, %475, %cst_226 [1] : vector<5x32xf32> to vector<5xf32>
    %477 = vector.shape_cast %476 : vector<5xf32> to vector<5x1xf32>
    %cst_227 = arith.constant 3.200000e+01 : f32
    %478 = vector.broadcast %cst_227 : f32 to vector<5x1xf32>
    %479 = arith.divf %477, %478 : vector<5x1xf32>
    %480 = vector.broadcast %472 : vector<5x1xf32> to vector<5x32xf32>
    %481 = arith.subf %446, %480 : vector<5x32xf32>
    %cst_228 = arith.constant 9.99999974E-6 : f32
    %482 = vector.broadcast %cst_228 : f32 to vector<5x1xf32>
    %483 = arith.addf %479, %482 : vector<5x1xf32>
    %484 = math.rsqrt %483 : vector<5x1xf32>
    %485 = vector.broadcast %484 : vector<5x1xf32> to vector<5x32xf32>
    %486 = arith.mulf %481, %485 : vector<5x32xf32>
    %487 = vector.broadcast %322 : vector<1x32xf32> to vector<5x32xf32>
    %488 = arith.mulf %486, %487 : vector<5x32xf32>
    %489 = vector.broadcast %324 : vector<1x32xf32> to vector<5x32xf32>
    %490 = arith.addf %488, %489 : vector<5x32xf32>
    %cst_229 = arith.constant dense<0.000000e+00> : vector<5x64xf32>
    %491 = tpu.matmul %468, %326, %cst_229 {dimension_numbers = #tpu.dot_dimension_numbers<[1], [0], [0], [1], [0, 0, 1, 1], [], []>} : vector<5x32xf32>, vector<32x64xf32>, vector<5x64xf32> -> vector<5x64xf32>
    %492 = vector.broadcast %328 : vector<1x64xf32> to vector<5x64xf32>
    %493 = arith.addf %491, %492 : vector<5x64xf32>
    %cst_230 = arith.constant 5.000000e-01 : f32
    %494 = vector.broadcast %cst_230 : f32 to vector<5x64xf32>
    %495 = arith.mulf %494, %493 : vector<5x64xf32>
    %cst_231 = arith.constant 0.707106769 : f32
    %496 = vector.broadcast %cst_231 : f32 to vector<5x64xf32>
    %497 = arith.mulf %493, %496 : vector<5x64xf32>
    %cst_232 = arith.constant 0.000000e+00 : f32
    %498 = vector.broadcast %cst_232 : f32 to vector<5x64xf32>
    %499 = arith.cmpf oge, %497, %498 : vector<5x64xf32>
    %cst_233 = arith.constant 1.000000e+00 : f32
    %cst_234 = arith.constant -1.000000e+00 : f32
    %500 = vector.broadcast %cst_233 : f32 to vector<5x64xf32>
    %501 = vector.broadcast %cst_234 : f32 to vector<5x64xf32>
    %502 = arith.select %499, %500, %501 : vector<5x64xi1>, vector<5x64xf32>
    %503 = math.absf %497 : vector<5x64xf32>
    %cst_235 = arith.constant 0.327591091 : f32
    %504 = vector.broadcast %cst_235 : f32 to vector<5x64xf32>
    %505 = arith.mulf %504, %503 : vector<5x64xf32>
    %cst_236 = arith.constant 1.000000e+00 : f32
    %506 = vector.broadcast %cst_236 : f32 to vector<5x64xf32>
    %507 = arith.addf %506, %505 : vector<5x64xf32>
    %cst_237 = arith.constant 1.000000e+00 : f32
    %508 = vector.broadcast %cst_237 : f32 to vector<5x64xf32>
    %509 = arith.divf %508, %507 : vector<5x64xf32>
    %cst_238 = arith.constant 1.06140542 : f32
    %510 = vector.broadcast %cst_238 : f32 to vector<5x64xf32>
    %511 = arith.mulf %510, %509 : vector<5x64xf32>
    %cst_239 = arith.constant -1.45315206 : f32
    %512 = vector.broadcast %cst_239 : f32 to vector<5x64xf32>
    %513 = arith.addf %511, %512 : vector<5x64xf32>
    %514 = arith.mulf %513, %509 : vector<5x64xf32>
    %cst_240 = arith.constant 1.42141378 : f32
    %515 = vector.broadcast %cst_240 : f32 to vector<5x64xf32>
    %516 = arith.addf %514, %515 : vector<5x64xf32>
    %517 = arith.mulf %516, %509 : vector<5x64xf32>
    %cst_241 = arith.constant -0.284496725 : f32
    %518 = vector.broadcast %cst_241 : f32 to vector<5x64xf32>
    %519 = arith.addf %517, %518 : vector<5x64xf32>
    %520 = arith.mulf %519, %509 : vector<5x64xf32>
    %cst_242 = arith.constant 0.254829586 : f32
    %521 = vector.broadcast %cst_242 : f32 to vector<5x64xf32>
    %522 = arith.addf %520, %521 : vector<5x64xf32>
    %523 = arith.mulf %522, %509 : vector<5x64xf32>
    %cst_243 = arith.constant 0.000000e+00 : f32
    %524 = vector.broadcast %cst_243 : f32 to vector<5x64xf32>
    %525 = arith.subf %524, %503 : vector<5x64xf32>
    %526 = arith.mulf %525, %503 : vector<5x64xf32>
    %527 = math.exp %526 : vector<5x64xf32>
    %528 = arith.mulf %523, %527 : vector<5x64xf32>
    %cst_244 = arith.constant 1.000000e+00 : f32
    %529 = vector.broadcast %cst_244 : f32 to vector<5x64xf32>
    %530 = arith.subf %529, %528 : vector<5x64xf32>
    %531 = arith.mulf %502, %530 : vector<5x64xf32>
    %cst_245 = arith.constant 1.000000e+00 : f32
    %532 = vector.broadcast %cst_245 : f32 to vector<5x64xf32>
    %533 = arith.addf %532, %531 : vector<5x64xf32>
    %534 = arith.mulf %495, %533 : vector<5x64xf32>
    %cst_246 = arith.constant dense<0.000000e+00> : vector<5x64xf32>
    %535 = tpu.matmul %490, %326, %cst_246 {dimension_numbers = #tpu.dot_dimension_numbers<[1], [0], [0], [1], [0, 0, 1, 1], [], []>} : vector<5x32xf32>, vector<32x64xf32>, vector<5x64xf32> -> vector<5x64xf32>
    %536 = vector.broadcast %328 : vector<1x64xf32> to vector<5x64xf32>
    %537 = arith.addf %535, %536 : vector<5x64xf32>
    %cst_247 = arith.constant 5.000000e-01 : f32
    %538 = vector.broadcast %cst_247 : f32 to vector<5x64xf32>
    %539 = arith.mulf %538, %537 : vector<5x64xf32>
    %cst_248 = arith.constant 0.707106769 : f32
    %540 = vector.broadcast %cst_248 : f32 to vector<5x64xf32>
    %541 = arith.mulf %537, %540 : vector<5x64xf32>
    %cst_249 = arith.constant 0.000000e+00 : f32
    %542 = vector.broadcast %cst_249 : f32 to vector<5x64xf32>
    %543 = arith.cmpf oge, %541, %542 : vector<5x64xf32>
    %cst_250 = arith.constant 1.000000e+00 : f32
    %cst_251 = arith.constant -1.000000e+00 : f32
    %544 = vector.broadcast %cst_250 : f32 to vector<5x64xf32>
    %545 = vector.broadcast %cst_251 : f32 to vector<5x64xf32>
    %546 = arith.select %543, %544, %545 : vector<5x64xi1>, vector<5x64xf32>
    %547 = math.absf %541 : vector<5x64xf32>
    %cst_252 = arith.constant 0.327591091 : f32
    %548 = vector.broadcast %cst_252 : f32 to vector<5x64xf32>
    %549 = arith.mulf %548, %547 : vector<5x64xf32>
    %cst_253 = arith.constant 1.000000e+00 : f32
    %550 = vector.broadcast %cst_253 : f32 to vector<5x64xf32>
    %551 = arith.addf %550, %549 : vector<5x64xf32>
    %cst_254 = arith.constant 1.000000e+00 : f32
    %552 = vector.broadcast %cst_254 : f32 to vector<5x64xf32>
    %553 = arith.divf %552, %551 : vector<5x64xf32>
    %cst_255 = arith.constant 1.06140542 : f32
    %554 = vector.broadcast %cst_255 : f32 to vector<5x64xf32>
    %555 = arith.mulf %554, %553 : vector<5x64xf32>
    %cst_256 = arith.constant -1.45315206 : f32
    %556 = vector.broadcast %cst_256 : f32 to vector<5x64xf32>
    %557 = arith.addf %555, %556 : vector<5x64xf32>
    %558 = arith.mulf %557, %553 : vector<5x64xf32>
    %cst_257 = arith.constant 1.42141378 : f32
    %559 = vector.broadcast %cst_257 : f32 to vector<5x64xf32>
    %560 = arith.addf %558, %559 : vector<5x64xf32>
    %561 = arith.mulf %560, %553 : vector<5x64xf32>
    %cst_258 = arith.constant -0.284496725 : f32
    %562 = vector.broadcast %cst_258 : f32 to vector<5x64xf32>
    %563 = arith.addf %561, %562 : vector<5x64xf32>
    %564 = arith.mulf %563, %553 : vector<5x64xf32>
    %cst_259 = arith.constant 0.254829586 : f32
    %565 = vector.broadcast %cst_259 : f32 to vector<5x64xf32>
    %566 = arith.addf %564, %565 : vector<5x64xf32>
    %567 = arith.mulf %566, %553 : vector<5x64xf32>
    %cst_260 = arith.constant 0.000000e+00 : f32
    %568 = vector.broadcast %cst_260 : f32 to vector<5x64xf32>
    %569 = arith.subf %568, %547 : vector<5x64xf32>
    %570 = arith.mulf %569, %547 : vector<5x64xf32>
    %571 = math.exp %570 : vector<5x64xf32>
    %572 = arith.mulf %567, %571 : vector<5x64xf32>
    %cst_261 = arith.constant 1.000000e+00 : f32
    %573 = vector.broadcast %cst_261 : f32 to vector<5x64xf32>
    %574 = arith.subf %573, %572 : vector<5x64xf32>
    %575 = arith.mulf %546, %574 : vector<5x64xf32>
    %cst_262 = arith.constant 1.000000e+00 : f32
    %576 = vector.broadcast %cst_262 : f32 to vector<5x64xf32>
    %577 = arith.addf %576, %575 : vector<5x64xf32>
    %578 = arith.mulf %539, %577 : vector<5x64xf32>
    %cst_263 = arith.constant dense<0.000000e+00> : vector<5x32xf32>
    %579 = tpu.matmul %534, %330, %cst_263 {dimension_numbers = #tpu.dot_dimension_numbers<[1], [0], [0], [1], [0, 0, 1, 1], [], []>} : vector<5x64xf32>, vector<64x32xf32>, vector<5x32xf32> -> vector<5x32xf32>
    %580 = arith.addf %442, %579 : vector<5x32xf32>
    %581 = vector.broadcast %332 : vector<1x32xf32> to vector<5x32xf32>
    %582 = arith.addf %580, %581 : vector<5x32xf32>
    %cst_264 = arith.constant dense<0.000000e+00> : vector<5x32xf32>
    %583 = tpu.matmul %578, %330, %cst_264 {dimension_numbers = #tpu.dot_dimension_numbers<[1], [0], [0], [1], [0, 0, 1, 1], [], []>} : vector<5x64xf32>, vector<64x32xf32>, vector<5x32xf32> -> vector<5x32xf32>
    %584 = arith.addf %446, %583 : vector<5x32xf32>
    %585 = vector.broadcast %332 : vector<1x32xf32> to vector<5x32xf32>
    %586 = arith.addf %584, %585 : vector<5x32xf32>
    %c0_265 = arith.constant 0 : index
    %c0_266 = arith.constant 0 : index
    %587 = vector.load %arg21[%c0_265, %c0_266] : memref<32x10xf32, #tpu.memory_space<vmem>>, vector<32x10xf32>
    %c0_267 = arith.constant 0 : index
    %c0_268 = arith.constant 0 : index
    %588 = vector.load %arg22[%c0_267, %c0_268] : memref<1x10xf32, #tpu.memory_space<vmem>>, vector<1x10xf32>
    %589 = vector.extract_strided_slice %582 {offsets = [0, 0], sizes = [1, 32], strides = [1, 1]} : vector<5x32xf32> to vector<1x32xf32>
    %cst_269 = arith.constant dense<0.000000e+00> : vector<1x10xf32>
    %590 = tpu.matmul %589, %587, %cst_269 {dimension_numbers = #tpu.dot_dimension_numbers<[1], [0], [0], [1], [0, 0, 1, 1], [], []>} : vector<1x32xf32>, vector<32x10xf32>, vector<1x10xf32> -> vector<1x10xf32>
    %591 = arith.addf %590, %588 : vector<1x10xf32>
    %c0_270 = arith.constant 0 : index
    %c0_271 = arith.constant 0 : index
    %592 = vector.load %arg23[%c0_270, %c0_271] : memref<2x10xf32, #tpu.memory_space<vmem>>, vector<1x10xf32>
    tpu.vector_store %arg23[%c0_270, %c0_271], %591 {strides = array<i32>} : memref<2x10xf32, #tpu.memory_space<vmem>>, vector<1x10xf32>,
    %593 = vector.extract_strided_slice %586 {offsets = [0, 0], sizes = [1, 32], strides = [1, 1]} : vector<5x32xf32> to vector<1x32xf32>
    %cst_272 = arith.constant dense<0.000000e+00> : vector<1x10xf32>
    %594 = tpu.matmul %593, %587, %cst_272 {dimension_numbers = #tpu.dot_dimension_numbers<[1], [0], [0], [1], [0, 0, 1, 1], [], []>} : vector<1x32xf32>, vector<32x10xf32>, vector<1x10xf32> -> vector<1x10xf32>
    %595 = arith.addf %594, %588 : vector<1x10xf32>
    %c1_273 = arith.constant 1 : index
    %c0_274 = arith.constant 0 : index
    %596 = vector.load %arg23[%c1_273, %c0_274] : memref<2x10xf32, #tpu.memory_space<vmem>>, vector<1x10xf32>
    tpu.vector_store %arg23[%c1_273, %c0_274], %595 {strides = array<i32>} : memref<2x10xf32, #tpu.memory_space<vmem>>, vector<1x10xf32>,
    return
  }
}

</mosaic_0001>

<bundles_post_ra>
// kernel: _lambda_.1
= control target key start
LH: loop header
LB: loop body
LE: loop exit
PB: predicated region body
PF: predicated region fallthrough
CT: control target
= control target key end

     0   :  { %s5884_s0 = inlined_call_operand.vmem [shape: f32[2,5,256], index: 0, kind: input, shape index: {}]   ;;  %s5885_s1 = inlined_call_operand.vmem [shape: f32[2,5,32], index: 1, kind: input, shape index: {}]   ;;  %s5886_s2 = inlined_call_operand.vmem [shape: f32[256,32], index: 2, kind: input, shape index: {}]   ;;  %s5887_s3 = inlined_call_operand.vmem [shape: f32[32,4], index: 3, kind: input, shape index: {}]   ;;  %s5888_s4 = inlined_call_operand.vmem [shape: f32[4,32], index: 4, kind: input, shape index: {}]   ;;  %s5889_s5 = inlined_call_operand.vmem [shape: f32[2,1,32], index: 5, kind: input, shape index: {}]   ;;  %s5890_s6 = inlined_call_operand.vmem [shape: f32[2,1,32], index: 6, kind: input, shape index: {}]   ;;  %s5891_s7 = inlined_call_operand.vmem [shape: f32[2,32,32], index: 7, kind: input, shape index: {}]   ;;  %s5892_s8 = inlined_call_operand.vmem [shape: f32[2,32,32], index: 8, kind: input, shape index: {}]   ;;  %s5893_s9 = inlined_call_operand.vmem [shape: f32[2,32,32], index: 9, kind: input, shape index: {}]   ;;  %s5894_s10 = inlined_call_operand.vmem [shape: f32[2,1,32], index: 10, kind: input, shape index: {}]   ;;  %s5895_s11 = inlined_call_operand.vmem [shape: f32[2,1,32], index: 11, kind: input, shape index: {}]   ;;  %s5896_s12 = inlined_call_operand.vmem [shape: f32[2,1,32], index: 12, kind: input, shape index: {}]   ;;  %s5897_s13 = inlined_call_operand.vmem [shape: f32[2,32,32], index: 13, kind: input, shape index: {}]   ;;  %s5898_s14 = inlined_call_operand.vmem [shape: f32[2,1,32], index: 14, kind: input, shape index: {}]   ;;  %s5899_s15 = inlined_call_operand.vmem [shape: f32[2,1,32], index: 15, kind: input, shape index: {}]   ;;  %s5900_s16 = inlined_call_operand.vmem [shape: f32[2,1,32], index: 16, kind: input, shape index: {}]   ;;  %s5901_s17 = inlined_call_operand.vmem [shape: f32[2,32,64], index: 17, kind: input, shape index: {}]   ;;  %s5902_s18 = inlined_call_operand.vmem [shape: f32[2,1,64], index: 18, kind: input, shape index: {}]   ;;  %s5903_s19 = inlined_call_operand.vmem [shape: f32[2,64,32], index: 19, kind: input, shape index: {}]   ;;  %s5904_s20 = inlined_call_operand.vmem [shape: f32[2,1,32], index: 20, kind: input, shape index: {}]   ;;  %s5905_s21 = inlined_call_operand.vmem [shape: f32[32,10], index: 21, kind: input, shape index: {}]   ;;  %s5906_s22 = inlined_call_operand.vmem [shape: f32[1,10], index: 22, kind: input, shape index: {}]   ;;  %s5907_s23 = inlined_call_operand.hbm [shape: f32[2,10], index: 23, kind: output, shape index: {}]  }
   0x1   :  { %5915 = sst [smem:[#allocation5_spill]] %s5884_s0 }
   0x2   :  { %5916 = sst [smem:[#allocation6_spill]] %s5885_s1 }
   0x3   :  { %5917 = sst [smem:[#allocation7_spill]] %s5886_s2 }
   0x4   :  { %5918 = sst [smem:[#allocation8_spill]] %s5887_s3 }
   0x5   :  { %5919 = sst [smem:[#allocation9_spill]] %s5888_s4 }
   0x6   :  { %5920 = sst [smem:[#allocation10_spill]] %s5889_s5 }
   0x7   :  { %5921 = sst [smem:[#allocation11_spill]] %s5890_s6 }
   0x8   :  { %5922 = sst [smem:[#allocation12_spill]] %s5891_s7 }
   0x9   :  { %s5923_s24 = sld [smem:[#allocation7_spill]]  ;;  %s5924_s28 = sld [smem:[#allocation5_spill]] }
   0xf   :  { %v96_v0 = vld [vmem:[%s5923_s24 + $0x80] sm:$0xff]  ;;  %v97_v1 = vld [vmem:[%s5923_s24 + $0x88] sm:$0xff]  ;;  %v98_v5 = vld [vmem:[%s5923_s24 + $0x90] sm:$0xff] }
  0x10   :  { %v80_v2 = vld [vmem:[%s5923_s24] sm:$0xff]  ;;  %v4690_v3 = vpack.c.bf16 %v97_v1, %v96_v0  ;;  %v81_v4 = vld [vmem:[%s5923_s24 + $0x8] sm:$0xff]  ;;  %v99_v6 = vld [vmem:[%s5923_s24 + $0x98] sm:$0xff] }
  0x11   :  { %v4692_v7 = vpack.c.bf16 %v81_v4, %v80_v2  ;;  %v4694_v8 = vpack.c.bf16 %v99_v6, %v98_v5  ;;  %v82_v9 = vld [vmem:[%s5923_s24 + $0x10] sm:$0xff]  ;;  %v83_v10 = vld [vmem:[%s5923_s24 + $0x18] sm:$0xff]  ;;  %v100_v11 = vld [vmem:[%s5923_s24 + $0xa0] sm:$0xff] }
  0x12   :  { %4691 = vmatprep.subr.bf16.mxu0 %v4690_v3  ;;  %4723 = vmatprep.subr.bf16.mxu1 %v4690_v3  ;;  %v101_v12 = vld [vmem:[%s5923_s24 + $0xa8] sm:$0xff]  ;;  %v4696_v13 = vpack.c.bf16 %v83_v10, %v82_v9  ;;  %v84_v15 = vld [vmem:[%s5923_s24 + $0x20] sm:$0xff]  ;;  %v102_v17 = vld [vmem:[%s5923_s24 + $0xb0] sm:$0xff] }
  0x13   :  { %4693 = vmatpush3.bf16.msra.mxu0 %v4692_v7  ;;  %4725 = vmatpush3.bf16.msra.mxu1 %v4692_v7  ;;  %v4698_v14 = vpack.c.bf16 %v101_v12, %v100_v11  ;;  %v85_v16 = vld [vmem:[%s5923_s24 + $0x28] sm:$0xff]  ;;  %v103_v18 = vld [vmem:[%s5923_s24 + $0xb8] sm:$0xff]  ;;  %v86_v21 = vld [vmem:[%s5923_s24 + $0x30] sm:$0xff] }
  0x14   :  { %4695 = vmatprep.subr.bf16.mxu0 %v4694_v8  ;;  %4727 = vmatprep.subr.bf16.mxu1 %v4694_v8  ;;  %v4700_v19 = vpack.c.bf16 %v85_v16, %v84_v15  ;;  %v4702_v20 = vpack.c.bf16 %v103_v18, %v102_v17  ;;  %v87_v22 = vld [vmem:[%s5923_s24 + $0x38] sm:$0xff]  ;;  %v104_v23 = vld [vmem:[%s5923_s24 + $0xc0] sm:$0xff]  ;;  %v105_v24 = vld [vmem:[%s5923_s24 + $0xc8] sm:$0xff] }
  0x15   :  { %v113_v25 = vld [vmem:[%s5924_s28 + $0x8] sm:$0x1f]  ;;  %v3862_v26 = vld [vmem:[%s5924_s28 + $0x18] sm:$0x1f]  ;;  %v4704_v27 = vpack.c.bf16 %v87_v22, %v86_v21 }
  0x16   :  { %179 = vmatprep.mubr.f32.mxu0 %v113_v25 }
  0x17   :  { %4697 = vmatpush3.bf16.msra.mxu0 %v4696_v13  ;;  %4729 = vmatpush3.bf16.msra.mxu1 %v4696_v13 }
  0x18   :  { %4699 = vmatprep.subr.bf16.mxu0 %v4698_v14  ;;  %4731 = vmatprep.subr.bf16.mxu1 %v4698_v14 }
  0x1b   :  { %4701 = vmatpush3.bf16.msra.mxu0 %v4700_v19  ;;  %4733 = vmatpush3.bf16.msra.mxu1 %v4700_v19 }
  0x1c   :  { %28 = vsyncpa [#allocation3], 0  ;;  %4703 = vmatprep.subr.bf16.mxu0 %v4702_v20  ;;  %4735 = vmatprep.subr.bf16.mxu1 %v4702_v20  ;;  %v4706_v28 = vpack.c.bf16 %v105_v24, %v104_v23  ;;  %v88_v29 = vld [vmem:[%s5923_s24 + $0x40] sm:$0xff]  ;;  %v89_v30 = vld [vmem:[%s5923_s24 + $0x48] sm:$0xff]  ;;  %s5925_s2 = sld [smem:[#allocation6_spill]]  ;;  %vm298_vm0 = vcmask 258048  }
  0x1d   :  { %v106_v31 = vld [vmem:[%s5923_s24 + $0xd0] sm:$0xff]  ;;  %v107_v32 = vld [vmem:[%s5923_s24 + $0xd8] sm:$0xff]  ;;  %254 = vmatprep.mubr.f32.mxu1 %v3862_v26  ;;  %v4708_v33 = vpack.c.bf16 %v89_v30, %v88_v29  ;;  %v108_v37 = vld [vmem:[%s5923_s24 + $0xe0] sm:$0xff]  ;;  %s5926_s29 = sld [smem:[#allocation12_spill]]  ;;  %v5067_v13 = vmov 0.0|0.0   ;;  %vm5068_vm1 = vmmov 0  }
  0x1e   :  { %v4710_v34 = vpack.c.bf16 %v107_v32, %v106_v31  ;;  %v90_v35 = vld [vmem:[%s5923_s24 + $0x50] sm:$0xff]  ;;  %v91_v36 = vld [vmem:[%s5923_s24 + $0x58] sm:$0xff]  ;;  %v109_v38 = vld [vmem:[%s5923_s24 + $0xe8] sm:$0xff]  ;;  %v5069_v17 = vmov 0.0   ;;  %s5927_s26 = sld [smem:[#allocation10_spill]]  ;;  %s5928_s0 = sld [smem:[#allocation11_spill]] }
  0x1f   :  { %4705 = vmatpush3.bf16.msra.mxu0 %v4704_v27  ;;  %4737 = vmatpush3.bf16.msra.mxu1 %v4704_v27  ;;  %v4712_v39 = vpack.c.bf16 %v91_v36, %v90_v35  ;;  %v4714_v40 = vpack.c.bf16 %v109_v38, %v108_v37  ;;  %v92_v41 = vld [vmem:[%s5923_s24 + $0x60] sm:$0xff]  ;;  %v93_v42 = vld [vmem:[%s5923_s24 + $0x68] sm:$0xff]  ;;  %v110_v43 = vld [vmem:[%s5923_s24 + $0xf0] sm:$0xff]  ;;  %vm348_vm2 = vcmask 261120   ;;  %s5929_s25 = sld [smem:[#allocation8_spill]]  ;;  %s5930_s5 = sld [smem:[#allocation9_spill]] }
  0x20   :  { %4707 = vmatprep.subr.bf16.mxu0 %v4706_v28  ;;  %4739 = vmatprep.subr.bf16.mxu1 %v4706_v28  ;;  %v111_v44 = vld [vmem:[%s5923_s24 + $0xf8] sm:$0xff]  ;;  %v4716_v45 = vpack.c.bf16 %v93_v42, %v92_v41  ;;  %v94_v47 = vld [vmem:[%s5923_s24 + $0x70] sm:$0xff]  ;;  %v112_v50 = vld [vmem:[%s5924_s28] sm:$0x1f]  ;;  %vm951_vm3 = vcmask 1043456   ;;  %vm947_vm4 = vcmask 31744  }
  0x21   :  { %v4718_v46 = vpack.c.bf16 %v111_v44, %v110_v43  ;;  %v95_v48 = vld [vmem:[%s5923_s24 + $0x78] sm:$0xff]  ;;  %v3861_v51 = vld [vmem:[%s5924_s28 + $0x10] sm:$0x1f]  ;;  %v266_v27 = vld [vmem:[%s5892_s8] sm:$0xff]  ;;  %vm1816_vm6 = vcmask 523264   ;;  %vm3771_vm10 = vcmask 73728  }
  0x22   :  { %v4720_v49 = vpack.c.bf16 %v95_v48, %v94_v47  ;;  %v114_v54 = vld [vmem:[%s5925_s2] sm:$0x1f]  ;;  %v3863_v56 = vld [vmem:[%s5925_s2 + $0x8] sm:$0x1f]  ;;  %v268_v35 = vld [vmem:[%s5892_s8 + $0x10] sm:$0xff] }
  0x23   :  { %4709 = vmatpush3.bf16.msra.mxu0 %v4708_v33  ;;  %4741 = vmatpush3.bf16.msra.mxu1 %v4708_v33  ;;  %v262_v10 = vld [vmem:[%s5926_s29] sm:$0xff]  ;;  %v263_v11 = vld [vmem:[%s5926_s29 + $0x8] sm:$0xff]  ;;  %v264_v14 = vld [vmem:[%s5926_s29 + $0x10] sm:$0xff] }
  0x24   :  { %4711 = vmatprep.subr.bf16.mxu0 %v4710_v34  ;;  %4743 = vmatprep.subr.bf16.mxu1 %v4710_v34  ;;  %v4755_v12 = vpack.c.bf16 %v263_v11, %v262_v10  ;;  %v265_v15 = vld [vmem:[%s5926_s29 + $0x18] sm:$0xff]  ;;  %v3864_v25 = vld [vmem:[%s5927_s26] ss:$0 sm:$0xff]  ;;  %v267_v28 = vld [vmem:[%s5892_s8 + $0x8] sm:$0xff] }
  0x25   :  { %v4758_v16 = vpack.c.bf16 %v265_v15, %v264_v14  ;;  %v3865_v29 = vld [vmem:[%s5928_s0] ss:$0 sm:$0xff]  ;;  %v4767_v32 = vpack.c.bf16 %v267_v28, %v266_v27  ;;  %v269_v36 = vld [vmem:[%s5892_s8 + $0x18] sm:$0xff]  ;;  %v271_v41 = vld [vmem:[%s5893_s9 + $0x8] sm:$0xff] }
  0x26   :  { %v4770_v38 = vpack.c.bf16 %v269_v36, %v268_v35  ;;  %v272_v43 = vld [vmem:[%s5893_s9 + $0x10] sm:$0xff]  ;;  %v273_v44 = vld [vmem:[%s5893_s9 + $0x18] sm:$0xff]  ;;  %v76_v47 = vld [vmem:[%s5929_s25 + $0x8] sm:$0xff] }
  0x27   :  { %4713 = vmatpush3.bf16.msra.mxu0 %v4712_v39  ;;  %4745 = vmatpush3.bf16.msra.mxu1 %v4712_v39 }
  0x28   :  { %4715 = vmatprep.subr.bf16.mxu0 %v4714_v40  ;;  %4747 = vmatprep.subr.bf16.mxu1 %v4714_v40  ;;  %v270_v40 = vld [vmem:[%s5893_s9] sm:$0xff] }
  0x29   :  { %v4779_v42 = vpack.c.bf16 %v271_v41, %v270_v40 }
  0x2b   :  { %4717 = vmatpush3.bf16.msra.mxu0 %v4716_v45  ;;  %4749 = vmatpush3.bf16.msra.mxu1 %v4716_v45  ;;  %v4782_v45 = vpack.c.bf16 %v273_v44, %v272_v43 }
  0x2c   :  { %4719 = vmatprep.subr.bf16.mxu0 %v4718_v46  ;;  %4751 = vmatprep.subr.bf16.mxu1 %v4718_v46  ;;  %v75_v46 = vld [vmem:[%s5929_s25] sm:$0xff] }
  0x2d   :  { %v5402_v48 = vpack.c.bf16 %v76_v47, %v75_v46 }
  0x2f   :  { %4721 = vmatpush3.bf16.msra.mxu0 %v4720_v49  ;;  %4753 = vmatpush3.bf16.msra.mxu1 %v4720_v49  ;;  %v77_v49 = vld [vmem:[%s5929_s25 + $0x10] sm:$0xff] }
  0x30   :  { %4754 = vmatprep.subr.bf16.mxu0 %v5067_v13  ;;  %4760 = vmatprep.subr.bf16.mxu1 %v5067_v13 }
  0x32   :  { %180 = vmatmul.mubr.f32.vlgmr.msra.gmra.mrb[0].mxu0 %v112_v50  ;;  %255 = vmatmul.mubr.f32.vlgmr.msra.gmra.mrb[0].mxu1 %v3861_v51  ;;  %v78_v50 = vld [vmem:[%s5929_s25 + $0x18] sm:$0xff] }
  0x33   :  { %4756 = vmatpush3.bf16.msra.mxu0 %v4755_v12  ;;  %4762 = vmatpush3.bf16.msra.mxu1 %v4755_v12  ;;  %v5414_v51 = vpack.c.bf16 %v78_v50, %v77_v49  ;;  %v5435_v12 = vld [vmem:[%s5930_s5] sm:$0xf] }
  0x34   :  { %4757 = vmatprep.subr.bf16.mxu0 %v5067_v13  ;;  %4763 = vmatprep.subr.bf16.mxu1 %v5067_v13 }
  0x35   :  { %4252 = vmatprep.mubr.msk.f32.mxu0 %vm5068_vm1, %v5069_v17  ;;  %4263 = vmatprep.mubr.msk.f32.mxu1 %vm5068_vm1, %v5069_v17 }
  0x37   :  { %4759 = vmatpush3.bf16.msra.mxu0 %v4758_v16  ;;  %4765 = vmatpush3.bf16.msra.mxu1 %v4758_v16 }
  0x38   :  { %4766 = vmatprep.subr.bf16.mxu0 %v5067_v13  ;;  %4772 = vmatprep.subr.bf16.mxu1 %v5067_v13 }
 0x105   :  { %v4004_v52 = vpop.f32.mrb[0].mxu0  ;;  %v4039_v53 = vpop.f32.mrb[0].mxu1 }
 0x106   :  { %v4005_v55 = vpop.f32.mrb[1].mxu0  ;;  %v4040_v57 = vpop.f32.mrb[1].mxu1 }
 0x107   :  { %v4006_v58 = vadd.f32 %v4005_v55, %v4004_v52  ;;  %v4041_v59 = vadd.f32 %v4040_v57, %v4039_v53 }
 0x109   :  { %v5306_v60 = vadd.f32 %v4006_v58, %v114_v54  ;;  %v5308_v61 = vadd.f32 %v4041_v59, %v3863_v56  ;;  %v3866_v54 = vld [vmem:[%s5894_s10] ss:$0 sm:$0xff] }
 0x10a   :  { %v3869_v58 = vld [vmem:[%s5895_s11] ss:$0 sm:$0xff] }
 0x10b   :  { %v299_v62 = vsel %vm298_vm0, %v5306_v60, 0.0  ;;  %v327_v63 = vsel %vm298_vm0, %v5308_v61, 0.0 }
 0x10c   :  { %300 = vadd.xlane.f32.xlu0 %v299_v62 }
 0x110   :  { %328 = vadd.xlane.f32.xlu0 %v327_v63 }
 0x199   :  { %v301_v0 = vpop.xlane.xlu0 %300 }
 0x19a   :  { %v303_v1 = vmul.f32 0.03125, %v301_v0 }
 0x19c   :  { %v304_v2 = vsub.f32 %v5306_v60, %v303_v1 }
 0x19d   :  { %v329_v3 = vpop.xlane.xlu0 %328 }
 0x19e   :  { %v330_v4 = vmul.f32 0.03125, %v329_v3  ;;  %v305_v5 = vmul.f32 %v304_v2, %v304_v2 }
 0x1a0   :  { %v331_v6 = vsub.f32 %v5308_v61, %v330_v4  ;;  %v306_v7 = vsel %vm298_vm0, %v305_v5, 0.0 }
 0x1a1   :  { %307 = vadd.xlane.f32.xlu1 %v306_v7 }
 0x1a2   :  { %v332_v8 = vmul.f32 %v331_v6, %v331_v6 }
 0x1a4   :  { %v333_v9 = vsel %vm298_vm0, %v332_v8, 0.0 }
 0x1a5   :  { %334 = vadd.xlane.f32.xlu1 %v333_v9 }
 0x22e   :  { %v308_v18 = vpop.xlane.xlu1 %307 }
 0x22f   :  { %v309_v19 = vmul.f32 0.03125, %v308_v18 }
 0x231   :  { %v310_v20 = vadd.f32 1e-05, %v309_v19 }
 0x232   :  { %v335_v21 = vpop.xlane.xlu1 %334 }
 0x233   :  { %4987 = vrsqrt.f32 %v310_v20  ;;  %v336_v22 = vmul.f32 0.03125, %v335_v21 }
 0x235   :  { %v337_v23 = vadd.f32 1e-05, %v336_v22 }
 0x237   :  { %4989 = vrsqrt.f32 %v337_v23 }
 0x23d   :  { %v4988_v24 = vpop.eup %4987 }
 0x23e   :  { %v312_v26 = vmul.f32 %v4988_v24, %v304_v2 }
 0x240   :  { %v319_v30 = vmul.f32 %v3864_v25, %v312_v26 }
 0x241   :  { %v4990_v31 = vpop.eup %4989 }
 0x242   :  { %v339_v33 = vmul.f32 %v4990_v31, %v331_v6  ;;  %v326_v34 = vadd.f32 %v3865_v29, %v319_v30 }
 0x244   :  { %4253 = vmatmul.mubr.msk.f32.vlgmr.msra.gmra.mrb[2].mxu0 %vm348_vm2, %v326_v34  ;;  %v340_v37 = vmul.f32 %v3864_v25, %v339_v33 }
 0x245   :  { %4768 = vmatpush3.bf16.msra.mxu0 %v4767_v32  ;;  %4274 = vmatprep.mubr.msk.f32.mxu0 %vm5068_vm1, %v5069_v17 }
 0x246   :  { %4769 = vmatprep.subr.bf16.mxu0 %v5067_v13  ;;  %v341_v39 = vadd.f32 %v3865_v29, %v340_v37 }
 0x248   :  { %4264 = vmatmul.mubr.msk.f32.vlgmr.msra.gmra.mrb[2].mxu1 %vm348_vm2, %v341_v39 }
 0x249   :  { %4771 = vmatpush3.bf16.msra.mxu0 %v4770_v38  ;;  %4774 = vmatpush3.bf16.msra.mxu1 %v4767_v32  ;;  %v3872_v32 = vld [vmem:[%s5896_s12] ss:$0 sm:$0xff] }
 0x24a   :  { %4775 = vmatprep.subr.bf16.mxu1 %v5067_v13  ;;  %4778 = vmatprep.subr.bf16.mxu0 %v5067_v13 }
 0x24b   :  { %4285 = vmatprep.mubr.msk.f32.mxu1 %vm5068_vm1, %v5069_v17 }
 0x24c   :  { %4275 = vmatmul.mubr.msk.f32.vlgmr.msra.gmra.mrb[4].mxu0 %vm348_vm2, %v326_v34 }
 0x24d   :  { %4777 = vmatpush3.bf16.msra.mxu1 %v4770_v38  ;;  %4780 = vmatpush3.bf16.msra.mxu0 %v4779_v42 }
 0x24e   :  { %4781 = vmatprep.subr.bf16.mxu0 %v5067_v13  ;;  %4784 = vmatprep.subr.bf16.mxu1 %v5067_v13 }
 0x24f   :  { %4296 = vmatprep.mubr.msk.f32.mxu0 %vm5068_vm1, %v5069_v17 }
 0x250   :  { %4286 = vmatmul.mubr.msk.f32.vlgmr.msra.gmra.mrb[4].mxu1 %vm348_vm2, %v341_v39 }
 0x251   :  { %4783 = vmatpush3.bf16.msra.mxu0 %v4782_v45  ;;  %4786 = vmatpush3.bf16.msra.mxu1 %v4779_v42 }
 0x252   :  { %4787 = vmatprep.subr.bf16.mxu1 %v5067_v13  ;;  %4307 = vmatprep.mubr.msk.f32.mxu1 %vm5068_vm1, %v5069_v17 }
 0x253   :  { %4790 = vmatprep.subr.bf16.mxu0 %v5067_v13 }
 0x254   :  { %4297 = vmatmul.mubr.msk.f32.vlgmr.msra.gmra.mrb[6].mxu0 %vm348_vm2, %v326_v34 }
 0x255   :  { %4789 = vmatpush3.bf16.msra.mxu1 %v4782_v45  ;;  %4318 = vmatprep.mubr.msk.f32.mxu0 %vm5068_vm1, %v5069_v17 }
 0x256   :  { %4796 = vmatprep.subr.bf16.mxu1 %v5067_v13  ;;  %4792 = vmatpush3.bf16.msra.mxu0 %v5402_v48 }
 0x257   :  { %4793 = vmatprep.subr.bf16.mxu0 %v5067_v13 }
 0x258   :  { %4308 = vmatmul.mubr.msk.f32.vlgmr.msra.gmra.mrb[6].mxu1 %vm348_vm2, %v341_v39 }
 0x259   :  { %4329 = vmatprep.mubr.msk.f32.mxu1 %vm5068_vm1, %v5069_v17  ;;  %4798 = vmatpush3.bf16.msra.mxu1 %v5402_v48 }
 0x25a   :  { %4799 = vmatprep.subr.bf16.mxu1 %v5067_v13  ;;  %4795 = vmatpush3.bf16.msra.mxu0 %v5414_v51 }
 0x25b   :  { %4332 = vmatprep.subr.mxu0 %v5069_v17 }
 0x25d   :  { %4801 = vmatpush3.bf16.msra.mxu1 %v5414_v51 }
 0x25e   :  { %4337 = vmatprep.subr.mxu1 %v5069_v17 }
 0x317   :  { %v418_v52 = vpop.f32.mrb[2].mxu0 }
 0x318   :  { %v4254_v53 = vpop.f32.mrb[3].mxu0  ;;  %v419_v62 = vadd.f32 %v3866_v54, %v418_v52 }
 0x31b   :  { %v491_v55 = vpop.f32.mrb[2].mxu1 }
 0x31c   :  { %v492_v56 = vadd.f32 %v3866_v54, %v491_v55  ;;  %v4265_v57 = vpop.f32.mrb[3].mxu1 }
 0x31f   :  { %v567_v59 = vpop.f32.mrb[4].mxu0 }
 0x320   :  { %v568_v63 = vadd.f32 %v3869_v58, %v567_v59  ;;  %v4276_v0 = vpop.f32.mrb[5].mxu0  ;;  %v278_v59 = vld [vmem:[%s5897_s13 + $0x8] sm:$0xff] }
 0x322   :  { %v787_v1 = vmul.f32 %v568_v63, %v419_v62  ;;  %v1102_v2 = vmul.f32 %v568_v63, %v492_v56 }
 0x323   :  { %v637_v3 = vpop.f32.mrb[4].mxu1 }
 0x324   :  { %v638_v4 = vadd.f32 %v3869_v58, %v637_v3  ;;  %v4287_v5 = vpop.f32.mrb[5].mxu1  ;;  %4319 = vmatmul.mubr.msk.f32.vlgmr.msra.gmra.mrb[8].mxu0 %vm348_vm2, %v787_v1  ;;  %v277_v58 = vld [vmem:[%s5897_s13] sm:$0xff]  ;;  %v280_v3 = vld [vmem:[%s5897_s13 + $0x18] sm:$0xff] }
 0x325   :  { %4334 = vmatprep.mubr.msk.f32.mxu0 %vm5068_vm1, %v5069_v17  ;;  %4333 = vmatpush3.msk.msra.mxu0 %vm951_vm3, %v5435_v12  ;;  %v4815_v63 = vpack.c.bf16 %v278_v59, %v277_v58  ;;  %v294_v58 = vld [vmem:[%s5903_s19 + $0x28] sm:$0xff] }
 0x326   :  { %v862_v6 = vmul.f32 %v638_v4, %v419_v62  ;;  %v1177_v7 = vmul.f32 %v638_v4, %v492_v56  ;;  %4802 = vmatprep.subr.bf16.mxu0 %v5067_v13 }
 0x327   :  { %v713_v8 = vpop.f32.mrb[6].mxu0 }
 0x328   :  { %v4298_v9 = vpop.f32.mrb[7].mxu0  ;;  %4330 = vmatmul.mubr.msk.f32.vlgmr.msra.gmra.mrb[8].mxu1 %vm348_vm2, %v862_v6  ;;  %v714_v33 = vadd.f32 %v3872_v32, %v713_v8 }
 0x329   :  { %4339 = vmatprep.mubr.msk.f32.mxu1 %vm5068_vm1, %v5069_v17  ;;  %4338 = vmatpush3.msk.msra.mxu1 %vm951_vm3, %v5435_v12 }
 0x32a   :  { %4808 = vmatprep.subr.bf16.mxu1 %v5067_v13 }
 0x32b   :  { %v783_v10 = vpop.f32.mrb[6].mxu1 }
 0x32c   :  { %v4309_v11 = vpop.f32.mrb[7].mxu1  ;;  %v784_v34 = vadd.f32 %v3872_v32, %v783_v10 }
 0x3f7   :  { %v857_v14 = vpop.f32.mrb[8].mxu0 }
 0x3f8   :  { %v4320_v15 = vpop.f32.mrb[9].mxu0  ;;  %v861_v18 = vmul.f32 0.35355338, %v857_v14  ;;  %v3888_v14 = vld [vmem:[%s5898_s14] ss:$0 sm:$0xff] }
 0x3fb   :  { %v932_v16 = vpop.f32.mrb[8].mxu1 }
 0x3fc   :  { %v936_v19 = vmul.f32 0.35355338, %v932_v16  ;;  %v4331_v20 = vpop.f32.mrb[9].mxu1 }
 0x3fe   :  { %v937_v21 = vmax.f32 %v861_v18, %v936_v19 }
 0x400   :  { %v938_v22 = vsub.f32 %v861_v18, %v937_v21  ;;  %v941_v23 = vsub.f32 %v936_v19, %v937_v21 }
 0x402   :  { %v939_v24 = vmul.f32 1.442695, %v938_v22  ;;  %v942_v25 = vmul.f32 1.442695, %v941_v23 }
 0x404   :  { %4991 = vpow2.f32 %v939_v24 }
 0x405   :  { %4993 = vpow2.f32 %v942_v25 }
 0x40e   :  { %v4992_v26 = vpop.eup %4991 }
 0x40f   :  { %v4994_v27 = vpop.eup %4993 }
 0x410   :  { %v944_v28 = vadd.f32 %v4994_v27, %v4992_v26 }
 0x412   :  { %4995 = vrcp.f32 %v944_v28  ;;  %v286_v28 = vld [vmem:[%s5901_s17 + $0x10] sm:$0xff] }
 0x41c   :  { %v4996_v29 = vpop.eup %4995 }
 0x41d   :  { %v946_v30 = vmul.f32 %v4996_v29, %v4992_v26  ;;  %v1026_v31 = vmul.f32 %v4996_v29, %v4994_v27  ;;  %v284_v26 = vld [vmem:[%s5901_s17] sm:$0xff]  ;;  %v287_v29 = vld [vmem:[%s5901_s17 + $0x18] sm:$0xff] }
 0x41f   :  { %4335 = vmatmul.mubr.msk.f32.vlgmr.msra.gmra.mrb[10].mxu0 %vm947_vm4, %v946_v30  ;;  %4340 = vmatmul.mubr.msk.f32.vlgmr.msra.gmra.mrb[10].mxu1 %vm947_vm4, %v1026_v31  ;;  %v4830_v30 = vpack.c.bf16 %v287_v29, %v286_v28 }
 0x420   :  { %4804 = vmatpush3.bf16.msra.mxu0 %v5402_v48  ;;  %4810 = vmatpush3.bf16.msra.mxu1 %v5402_v48 }
 0x421   :  { %4805 = vmatprep.subr.bf16.mxu0 %v5067_v13  ;;  %4811 = vmatprep.subr.bf16.mxu1 %v5067_v13 }
 0x422   :  { %4350 = vmatprep.mubr.msk.f32.mxu0 %vm5068_vm1, %v5069_v17  ;;  %4361 = vmatprep.mubr.msk.f32.mxu1 %vm5068_vm1, %v5069_v17 }
 0x424   :  { %4807 = vmatpush3.bf16.msra.mxu0 %v5414_v51  ;;  %4813 = vmatpush3.bf16.msra.mxu1 %v5414_v51 }
 0x425   :  { %4364 = vmatprep.subr.mxu0 %v5069_v17  ;;  %4369 = vmatprep.subr.mxu1 %v5069_v17 }
 0x427   :  { %4351 = vmatmul.mubr.msk.f32.vlgmr.msra.gmra.mrb[12].mxu0 %vm348_vm2, %v1102_v2  ;;  %4362 = vmatmul.mubr.msk.f32.vlgmr.msra.gmra.mrb[12].mxu1 %vm348_vm2, %v1177_v7  ;;  %v279_v2 = vld [vmem:[%s5897_s13 + $0x10] sm:$0xff] }
 0x428   :  { %4365 = vmatpush3.msk.msra.mxu0 %vm951_vm3, %v5435_v12  ;;  %4370 = vmatpush3.msk.msra.mxu1 %vm951_vm3, %v5435_v12  ;;  %v4818_v4 = vpack.c.bf16 %v280_v3, %v279_v2 }
 0x429   :  { %4366 = vmatprep.mubr.msk.f32.mxu0 %vm5068_vm1, %v5069_v17  ;;  %4371 = vmatprep.mubr.msk.f32.mxu1 %vm5068_vm1, %v5069_v17 }
 0x42a   :  { %4814 = vmatprep.subr.bf16.mxu0 %v5067_v13  ;;  %4820 = vmatprep.subr.bf16.mxu1 %v5067_v13 }
 0x4f2   :  { %v1021_v35 = vpop.f32.mrb[10].mxu0  ;;  %v1096_v36 = vpop.f32.mrb[10].mxu1 }
 0x4f3   :  { %v1025_v37 = vmul.f32 %v1021_v35, %v714_v33  ;;  %v1100_v38 = vmul.f32 %v1096_v36, %v784_v34  ;;  %v4336_v39 = vpop.f32.mrb[11].mxu0  ;;  %v4341_v40 = vpop.f32.mrb[11].mxu1 }
 0x4f4   :  { %v3890_v40 = vld [vmem:[%s5899_s15] ss:$0 sm:$0xff] }
 0x4f5   :  { %v1101_v41 = vadd.f32 %v1100_v38, %v1025_v37 }
 0x4fa   :  { %v1172_v42 = vpop.f32.mrb[12].mxu0  ;;  %v1247_v43 = vpop.f32.mrb[12].mxu1 }
 0x4fb   :  { %v1176_v44 = vmul.f32 0.35355338, %v1172_v42  ;;  %v1251_v45 = vmul.f32 0.35355338, %v1247_v43  ;;  %v4352_v46 = vpop.f32.mrb[13].mxu0  ;;  %v4363_v47 = vpop.f32.mrb[13].mxu1 }
 0x4fd   :  { %v1252_v49 = vmax.f32 %v1176_v44, %v1251_v45 }
 0x4ff   :  { %v1253_v50 = vsub.f32 %v1176_v44, %v1252_v49  ;;  %v1256_v52 = vsub.f32 %v1251_v45, %v1252_v49 }
 0x501   :  { %v1254_v53 = vmul.f32 1.442695, %v1253_v50  ;;  %v1257_v54 = vmul.f32 1.442695, %v1256_v52  ;;  %v289_v50 = vld [vmem:[%s5903_s19] sm:$0xff]  ;;  %v290_v52 = vld [vmem:[%s5903_s19 + $0x8] sm:$0xff] }
 0x503   :  { %4997 = vpow2.f32 %v1254_v53  ;;  %v4839_v53 = vpack.c.bf16 %v290_v52, %v289_v50 }
 0x504   :  { %4999 = vpow2.f32 %v1257_v54  ;;  %v291_v54 = vld [vmem:[%s5903_s19 + $0x10] sm:$0xff] }
 0x50d   :  { %v4998_v55 = vpop.eup %4997 }
 0x50e   :  { %v5000_v56 = vpop.eup %4999 }
 0x50f   :  { %v1259_v57 = vadd.f32 %v5000_v56, %v4998_v55 }
 0x511   :  { %5001 = vrcp.f32 %v1259_v57  ;;  %v293_v57 = vld [vmem:[%s5903_s19 + $0x20] sm:$0xff] }
 0x512   :  { %v4845_v59 = vpack.c.bf16 %v294_v58, %v293_v57 }
 0x51b   :  { %v5002_v62 = vpop.eup %5001 }
 0x51c   :  { %v1261_v0 = vmul.f32 %v5002_v62, %v4998_v55  ;;  %v1336_v1 = vmul.f32 %v5002_v62, %v5000_v56  ;;  %v292_v55 = vld [vmem:[%s5903_s19 + $0x18] sm:$0xff]  ;;  %v295_v62 = vld [vmem:[%s5903_s19 + $0x30] sm:$0xff] }
 0x51d   :  { %v4842_v56 = vpack.c.bf16 %v292_v55, %v291_v54 }
 0x51e   :  { %4367 = vmatmul.mubr.msk.f32.vlgmr.msra.gmra.mrb[14].mxu0 %vm947_vm4, %v1261_v0  ;;  %4372 = vmatmul.mubr.msk.f32.vlgmr.msra.gmra.mrb[14].mxu1 %vm947_vm4, %v1336_v1 }
 0x51f   :  { %4816 = vmatpush3.bf16.msra.mxu0 %v4815_v63  ;;  %4382 = vmatprep.mubr.msk.f32.mxu0 %vm5068_vm1, %v5069_v17 }
 0x520   :  { %4817 = vmatprep.subr.bf16.mxu0 %v5067_v13  ;;  %4822 = vmatpush3.bf16.msra.mxu1 %v4815_v63  ;;  %v296_v63 = vld [vmem:[%s5903_s19 + $0x38] sm:$0xff] }
 0x521   :  { %4823 = vmatprep.subr.bf16.mxu1 %v5067_v13  ;;  %4393 = vmatprep.mubr.msk.f32.mxu1 %vm5068_vm1, %v5069_v17  ;;  %v4848_v0 = vpack.c.bf16 %v296_v63, %v295_v62 }
 0x523   :  { %4819 = vmatpush3.bf16.msra.mxu0 %v4818_v4 }
 0x524   :  { %4825 = vmatpush3.bf16.msra.mxu1 %v4818_v4  ;;  %4826 = vmatprep.subr.bf16.mxu0 %v5067_v13 }
 0x525   :  { %4832 = vmatprep.subr.bf16.mxu1 %v5067_v13 }
 0x526   :  { %4383 = vmatmul.mubr.msk.f32.vlgmr.msra.gmra.mrb[16].mxu0 %vm348_vm2, %v1101_v41 }
 0x527   :  { %4404 = vmatprep.mubr.msk.f32.mxu0 %vm5068_vm1, %v5069_v17 }
 0x5f1   :  { %v1331_v5 = vpop.f32.mrb[14].mxu0  ;;  %v1406_v6 = vpop.f32.mrb[14].mxu1 }
 0x5f2   :  { %v1335_v7 = vmul.f32 %v1331_v5, %v714_v33  ;;  %v1410_v8 = vmul.f32 %v1406_v6, %v784_v34  ;;  %v4368_v9 = vpop.f32.mrb[15].mxu0  ;;  %v4373_v10 = vpop.f32.mrb[15].mxu1 }
 0x5f4   :  { %v1411_v11 = vadd.f32 %v1410_v8, %v1335_v7  ;;  %v3892_v8 = vld [vmem:[%s5902_s18] ss:$0 sm:$0xff] }
 0x5f6   :  { %4394 = vmatmul.mubr.msk.f32.vlgmr.msra.gmra.mrb[16].mxu1 %vm348_vm2, %v1411_v11 }
 0x5f7   :  { %4415 = vmatprep.mubr.msk.f32.mxu1 %vm5068_vm1, %v5069_v17 }
 0x5f9   :  { %v1481_v15 = vpop.f32.mrb[16].mxu0 }
 0x5fa   :  { %v1485_v16 = vadd.f32 %v1481_v15, %v5306_v60  ;;  %v4384_v18 = vpop.f32.mrb[17].mxu0  ;;  %v285_v60 = vld [vmem:[%s5901_s17 + $0x8] sm:$0xff] }
 0x5fb   :  { %v4827_v27 = vpack.c.bf16 %v285_v60, %v284_v26 }
 0x5fc   :  { %v5504_v19 = vadd.f32 %v3888_v14, %v1485_v16 }
 0x5fd   :  { %4828 = vmatpush3.bf16.msra.mxu0 %v4827_v27  ;;  %4834 = vmatpush3.bf16.msra.mxu1 %v4827_v27 }
 0x5fe   :  { %v1568_v20 = vsel %vm298_vm0, %v5504_v19, 0.0  ;;  %4829 = vmatprep.subr.bf16.mxu0 %v5067_v13  ;;  %4835 = vmatprep.subr.bf16.mxu1 %v5067_v13 }
 0x5ff   :  { %1569 = vadd.xlane.f32.xlu0 %v1568_v20 }
 0x601   :  { %4831 = vmatpush3.bf16.msra.mxu0 %v4830_v30  ;;  %4837 = vmatpush3.bf16.msra.mxu1 %v4830_v30 }
 0x602   :  { %4838 = vmatprep.subr.bf16.mxu0 %v5067_v13  ;;  %4850 = vmatprep.subr.bf16.mxu1 %v5067_v13 }
 0x68c   :  { %v1570_v21 = vpop.xlane.xlu0 %1569 }
 0x68d   :  { %v1571_v22 = vmul.f32 0.03125, %v1570_v21 }
 0x68f   :  { %v1572_v23 = vsub.f32 %v5504_v19, %v1571_v22 }
 0x691   :  { %v1573_v24 = vmul.f32 %v1572_v23, %v1572_v23 }
 0x693   :  { %v1574_v25 = vsel %vm298_vm0, %v1573_v24, 0.0 }
 0x694   :  { %1575 = vadd.xlane.f32.xlu0 %v1574_v25 }
 0x6c9   :  { %v1562_v31 = vpop.f32.mrb[16].mxu1 }
 0x6ca   :  { %v1566_v32 = vadd.f32 %v1562_v31, %v5308_v61  ;;  %v4395_v33 = vpop.f32.mrb[17].mxu1  ;;  %v3891_v61 = vld [vmem:[%s5900_s16] ss:$0 sm:$0xff] }
 0x6cc   :  { %v5527_v34 = vadd.f32 %v3888_v14, %v1566_v32 }
 0x6ce   :  { %v1595_v35 = vsel %vm298_vm0, %v5527_v34, 0.0 }
 0x6cf   :  { %1596 = vadd.xlane.f32.xlu1 %v1595_v35 }
 0x721   :  { %v1576_v36 = vpop.xlane.xlu0 %1575 }
 0x722   :  { %v1577_v37 = vmul.f32 0.03125, %v1576_v36  ;;  %v5070_v36 = vmov -1.0  }
 0x724   :  { %v1578_v38 = vadd.f32 1e-05, %v1577_v37 }
 0x726   :  { %5003 = vrsqrt.f32 %v1578_v38 }
 0x730   :  { %v5004_v39 = vpop.eup %5003 }
 0x731   :  { %v1580_v41 = vmul.f32 %v5004_v39, %v1572_v23 }
 0x733   :  { %v1587_v42 = vmul.f32 %v3890_v40, %v1580_v41 }
 0x735   :  { %v1594_v43 = vadd.f32 %v3891_v61, %v1587_v42 }
 0x737   :  { %4405 = vmatmul.mubr.msk.f32.vlgmr.msra.gmra.mrb[18].mxu0 %vm348_vm2, %v1594_v43 }
 0x738   :  { %4434 = vmatprep.mubr.msk.f32.mxu0 %vm5068_vm1, %v5069_v17  ;;  %4840 = vmatpush3.bf16.msra.mxu0 %v4839_v53 }
 0x739   :  { %4841 = vmatprep.subr.bf16.mxu0 %v5067_v13 }
 0x73c   :  { %4843 = vmatpush3.bf16.msra.mxu0 %v4842_v56 }
 0x73d   :  { %4844 = vmatprep.subr.bf16.mxu0 %v5067_v13 }
 0x740   :  { %4846 = vmatpush3.bf16.msra.mxu0 %v4845_v59 }
 0x741   :  { %4847 = vmatprep.subr.bf16.mxu0 %v5067_v13 }
 0x744   :  { %4849 = vmatpush3.bf16.msra.mxu0 %v4848_v0 }
 0x745   :  { %4862 = vmatprep.subr.bf16.mxu0 %v5067_v13 }
 0x75c   :  { %v1597_v44 = vpop.xlane.xlu1 %1596 }
 0x75d   :  { %v1598_v45 = vmul.f32 0.03125, %v1597_v44 }
 0x75f   :  { %v1599_v46 = vsub.f32 %v5527_v34, %v1598_v45 }
 0x761   :  { %v1600_v47 = vmul.f32 %v1599_v46, %v1599_v46 }
 0x763   :  { %v1601_v49 = vsel %vm298_vm0, %v1600_v47, 0.0 }
 0x764   :  { %1602 = vadd.xlane.f32.xlu1 %v1601_v49 }
 0x7f1   :  { %v1603_v1 = vpop.xlane.xlu1 %1602 }
 0x7f2   :  { %v1604_v2 = vmul.f32 0.03125, %v1603_v1 }
 0x7f4   :  { %v1605_v3 = vadd.f32 1e-05, %v1604_v2 }
 0x7f6   :  { %5005 = vrsqrt.f32 %v1605_v3 }
 0x800   :  { %v5006_v4 = vpop.eup %5005 }
 0x801   :  { %v1607_v5 = vmul.f32 %v5006_v4, %v1599_v46 }
 0x803   :  { %v1608_v6 = vmul.f32 %v3890_v40, %v1607_v5 }
 0x805   :  { %v1609_v7 = vadd.f32 %v3891_v61, %v1608_v6 }
 0x807   :  { %4416 = vmatmul.mubr.msk.f32.vlgmr.msra.gmra.mrb[18].mxu1 %vm348_vm2, %v1609_v7 }
 0x808   :  { %4852 = vmatpush3.bf16.msra.mxu1 %v4839_v53  ;;  %4453 = vmatprep.mubr.msk.f32.mxu1 %vm5068_vm1, %v5069_v17 }
 0x809   :  { %4853 = vmatprep.subr.bf16.mxu1 %v5067_v13 }
 0x80a   :  { %v1685_v9 = vpop.f32.mrb[18].mxu0 }
 0x80b   :  { %v1686_v10 = vadd.f32 %v3892_v8, %v1685_v9  ;;  %v4406_v11 = vpop.f32.mrb[19].mxu0  ;;  %v3896_v9 = vld [vmem:[%s5904_s20] ss:$0 sm:$0xff] }
 0x80c   :  { %4855 = vmatpush3.bf16.msra.mxu1 %v4842_v56 }
 0x80d   :  { %v1690_v14 = vmul.f32 0.70710677, %v1686_v10  ;;  %4856 = vmatprep.subr.bf16.mxu1 %v5067_v13  ;;  %v1689_v39 = vmul.f32 0.5, %v1686_v10 }
 0x80f   :  { %v1693_v15 = vand.u32 2147483647, %v1690_v14  ;;  %vm1691_vm5 = vcmp.ge.f32.partialorder %v1690_v14, 0.0 }
 0x810   :  { %4858 = vmatpush3.bf16.msra.mxu1 %v4845_v59  ;;  %v1692_v37 = vsel %vm1691_vm5, 1.0, %v5070_v36 }
 0x811   :  { %v1694_v16 = vmul.f32 0.3275911, %v1693_v15  ;;  %4859 = vmatprep.subr.bf16.mxu1 %v5067_v13  ;;  %v1707_v20 = vsub.f32 0.0, %v1693_v15 }
 0x813   :  { %v1695_v18 = vadd.f32 1.0, %v1694_v16  ;;  %v1708_v22 = vmul.f32 %v1707_v20, %v1693_v15 }
 0x814   :  { %4861 = vmatpush3.bf16.msra.mxu1 %v4848_v0 }
 0x815   :  { %5007 = vrcp.f32 %v1695_v18  ;;  %4868 = vmatprep.subr.bf16.mxu1 %v5067_v13  ;;  %v1709_v25 = vmul.f32 1.442695, %v1708_v22 }
 0x817   :  { %5009 = vpow2.f32 %v1709_v25 }
 0x81f   :  { %v5008_v21 = vpop.eup %5007 }
 0x820   :  { %v1698_v23 = vmul.f32 1.0614054, %v5008_v21 }
 0x821   :  { %v5010_v32 = vpop.eup %5009 }
 0x822   :  { %v1699_v24 = vadd.f32 -1.4531521, %v1698_v23 }
 0x824   :  { %v1700_v26 = vmul.f32 %v5008_v21, %v1699_v24  ;;  %v3900_v24 = vld [vmem:[%s5926_s29 + $0x20] sm:$0xff] }
 0x826   :  { %v1701_v60 = vadd.f32 1.4214138, %v1700_v26  ;;  %v3902_v26 = vld [vmem:[%s5926_s29 + $0x30] sm:$0xff] }
 0x828   :  { %v1702_v27 = vmul.f32 %v5008_v21, %v1701_v60  ;;  %v3903_v60 = vld [vmem:[%s5926_s29 + $0x38] sm:$0xff] }
 0x82a   :  { %v1703_v28 = vadd.f32 -0.28449672, %v1702_v27  ;;  %v4866_v27 = vpack.c.bf16 %v3903_v60, %v3902_v26 }
 0x82c   :  { %v1704_v29 = vmul.f32 %v5008_v21, %v1703_v28 }
 0x82e   :  { %v1705_v30 = vadd.f32 0.2548296, %v1704_v29 }
 0x830   :  { %v1706_v31 = vmul.f32 %v5008_v21, %v1705_v30 }
 0x832   :  { %v1711_v33 = vmul.f32 %v5010_v32, %v1706_v31 }
 0x834   :  { %v1712_v35 = vsub.f32 1.0, %v1711_v33 }
 0x836   :  { %v1713_v38 = vmul.f32 %v1712_v35, %v1692_v37 }
 0x838   :  { %v1714_v40 = vadd.f32 1.0, %v1713_v38 }
 0x83a   :  { %v1715_v41 = vmul.f32 %v1714_v40, %v1689_v39  ;;  %v3936_v39 = vld [vmem:[%s5927_s26 + $0x1] ss:$0 sm:$0xff] }
 0x83c   :  { %4435 = vmatmul.mubr.msk.f32.vlgmr.msra.gmra.mrb[20].mxu0 %vm1816_vm6, %v1715_v41  ;;  %v3905_v41 = vld [vmem:[%s5892_s8 + $0x28] sm:$0xff] }
 0x83d   :  { %4464 = vmatprep.mubr.msk.f32.mxu0 %vm5068_vm1, %v5069_v17 }
 0x8da   :  { %v1785_v61 = vpop.f32.mrb[18].mxu1 }
 0x8db   :  { %v1786_v42 = vadd.f32 %v3892_v8, %v1785_v61  ;;  %v4417_v43 = vpop.f32.mrb[19].mxu1  ;;  %v3937_v61 = vld [vmem:[%s5928_s0 + $0x1] ss:$0 sm:$0xff] }
 0x8dd   :  { %v1790_v44 = vmul.f32 0.70710677, %v1786_v42  ;;  %v1789_v6 = vmul.f32 0.5, %v1786_v42 }
 0x8df   :  { %v1793_v45 = vand.u32 2147483647, %v1790_v44  ;;  %vm1791_vm7 = vcmp.ge.f32.partialorder %v1790_v44, 0.0 }
 0x8e0   :  { %v1792_v4 = vsel %vm1791_vm7, 1.0, %v5070_v36 }
 0x8e1   :  { %v1794_v46 = vmul.f32 0.3275911, %v1793_v45  ;;  %v1807_v49 = vsub.f32 0.0, %v1793_v45 }
 0x8e3   :  { %v1795_v47 = vadd.f32 1.0, %v1794_v46  ;;  %v1808_v52 = vmul.f32 %v1807_v49, %v1793_v45  ;;  %v3906_v45 = vld [vmem:[%s5892_s8 + $0x30] sm:$0xff]  ;;  %v3907_v46 = vld [vmem:[%s5892_s8 + $0x38] sm:$0xff]  ;;  %v3908_v49 = vld [vmem:[%s5893_s9 + $0x20] sm:$0xff] }
 0x8e5   :  { %5011 = vrcp.f32 %v1795_v47  ;;  %v1809_v55 = vmul.f32 1.442695, %v1808_v52  ;;  %v4878_v47 = vpack.c.bf16 %v3907_v46, %v3906_v45 }
 0x8e7   :  { %5013 = vpow2.f32 %v1809_v55 }
 0x8ef   :  { %v5012_v50 = vpop.eup %5011 }
 0x8f0   :  { %v1798_v53 = vmul.f32 1.0614054, %v5012_v50 }
 0x8f1   :  { %v5014_v1 = vpop.eup %5013 }
 0x8f2   :  { %v1799_v54 = vadd.f32 -1.4531521, %v1798_v53  ;;  %v3910_v53 = vld [vmem:[%s5893_s9 + $0x30] sm:$0xff] }
 0x8f4   :  { %v1800_v56 = vmul.f32 %v5012_v50, %v1799_v54  ;;  %v3911_v54 = vld [vmem:[%s5893_s9 + $0x38] sm:$0xff] }
 0x8f5   :  { %v4890_v55 = vpack.c.bf16 %v3911_v54, %v3910_v53 }
 0x8f6   :  { %v1801_v57 = vadd.f32 1.4214138, %v1800_v56 }
 0x8f8   :  { %v1802_v58 = vmul.f32 %v5012_v50, %v1801_v57 }
 0x8fa   :  { %v1803_v59 = vadd.f32 -0.28449672, %v1802_v58 }
 0x8fc   :  { %v1804_v62 = vmul.f32 %v5012_v50, %v1803_v59 }
 0x8fe   :  { %v1805_v63 = vadd.f32 0.2548296, %v1804_v62 }
 0x900   :  { %v1806_v0 = vmul.f32 %v5012_v50, %v1805_v63  ;;  %v3909_v50 = vld [vmem:[%s5893_s9 + $0x28] sm:$0xff] }
 0x901   :  { %v4887_v52 = vpack.c.bf16 %v3909_v50, %v3908_v49 }
 0x902   :  { %v1811_v2 = vmul.f32 %v5014_v1, %v1806_v0 }
 0x904   :  { %v1812_v3 = vsub.f32 1.0, %v1811_v2 }
 0x906   :  { %v1813_v5 = vmul.f32 %v1812_v3, %v1792_v4 }
 0x908   :  { %v1814_v7 = vadd.f32 1.0, %v1813_v5 }
 0x90a   :  { %v1815_v8 = vmul.f32 %v1814_v7, %v1789_v6 }
 0x90c   :  { %4454 = vmatmul.mubr.msk.f32.vlgmr.msra.gmra.mrb[20].mxu1 %vm1816_vm6, %v1815_v8  ;;  %v3938_v8 = vld [vmem:[%s5894_s10 + $0x1] ss:$0 sm:$0xff] }
 0x90d   :  { %4475 = vmatprep.mubr.msk.f32.mxu1 %vm5068_vm1, %v5069_v17 }
 0x90f   :  { %v1886_v10 = vpop.f32.mrb[20].mxu0 }
 0x910   :  { %v1890_v11 = vadd.f32 %v1886_v10, %v5504_v19  ;;  %v4436_v14 = vpop.f32.mrb[21].mxu0  ;;  %v3901_v19 = vld [vmem:[%s5926_s29 + $0x28] sm:$0xff] }
 0x911   :  { %v4863_v25 = vpack.c.bf16 %v3901_v19, %v3900_v24 }
 0x912   :  { %v5592_v15 = vadd.f32 %v3896_v9, %v1890_v11 }
 0x913   :  { %4864 = vmatpush3.bf16.msra.mxu0 %v4863_v25  ;;  %4870 = vmatpush3.bf16.msra.mxu1 %v4863_v25 }
 0x914   :  { %v2027_v16 = vsel %vm298_vm0, %v5592_v15, 0.0  ;;  %4865 = vmatprep.subr.bf16.mxu0 %v5067_v13  ;;  %4871 = vmatprep.subr.bf16.mxu1 %v5067_v13 }
 0x915   :  { %2028 = vadd.xlane.f32.xlu0 %v2027_v16 }
 0x917   :  { %4867 = vmatpush3.bf16.msra.mxu0 %v4866_v27  ;;  %4873 = vmatpush3.bf16.msra.mxu1 %v4866_v27 }
 0x918   :  { %4874 = vmatprep.subr.bf16.mxu0 %v5067_v13  ;;  %4880 = vmatprep.subr.bf16.mxu1 %v5067_v13 }
 0x9a2   :  { %v2029_v18 = vpop.xlane.xlu0 %2028 }
 0x9a3   :  { %v2030_v20 = vmul.f32 0.03125, %v2029_v18 }
 0x9a5   :  { %v2031_v21 = vsub.f32 %v5592_v15, %v2030_v20 }
 0x9a7   :  { %v2032_v22 = vmul.f32 %v2031_v21, %v2031_v21 }
 0x9a9   :  { %v2033_v23 = vsel %vm298_vm0, %v2032_v22, 0.0 }
 0x9aa   :  { %2034 = vadd.xlane.f32.xlu0 %v2033_v23 }
 0x9df   :  { %v1967_v28 = vpop.f32.mrb[20].mxu1 }
 0x9e0   :  { %v1971_v29 = vadd.f32 %v1967_v28, %v5527_v34  ;;  %v4455_v30 = vpop.f32.mrb[21].mxu1  ;;  %v3904_v34 = vld [vmem:[%s5892_s8 + $0x20] sm:$0xff] }
 0x9e1   :  { %v4875_v43 = vpack.c.bf16 %v3905_v41, %v3904_v34 }
 0x9e2   :  { %v5615_v31 = vadd.f32 %v3896_v9, %v1971_v29  ;;  %v3941_v9 = vld [vmem:[%s5895_s11 + $0x1] ss:$0 sm:$0xff] }
 0x9e4   :  { %v2054_v32 = vsel %vm298_vm0, %v5615_v31, 0.0 }
 0x9e5   :  { %2055 = vadd.xlane.f32.xlu1 %v2054_v32 }
 0xa37   :  { %v2035_v33 = vpop.xlane.xlu0 %2034 }
 0xa38   :  { %v2036_v35 = vmul.f32 0.03125, %v2035_v33 }
 0xa3a   :  { %v2037_v37 = vadd.f32 1e-05, %v2036_v35 }
 0xa3c   :  { %5015 = vrsqrt.f32 %v2037_v37 }
 0xa46   :  { %v5016_v38 = vpop.eup %5015 }
 0xa47   :  { %v2039_v40 = vmul.f32 %v5016_v38, %v2031_v21 }
 0xa49   :  { %v2046_v42 = vmul.f32 %v3936_v39, %v2039_v40 }
 0xa4b   :  { %v2053_v44 = vadd.f32 %v3937_v61, %v2046_v42 }
 0xa4d   :  { %4465 = vmatmul.mubr.msk.f32.vlgmr.msra.gmra.mrb[22].mxu0 %vm348_vm2, %v2053_v44 }
 0xa4e   :  { %4876 = vmatpush3.bf16.msra.mxu0 %v4875_v43  ;;  %4486 = vmatprep.mubr.msk.f32.mxu0 %vm5068_vm1, %v5069_v17 }
 0xa4f   :  { %4877 = vmatprep.subr.bf16.mxu0 %v5067_v13 }
 0xa52   :  { %4879 = vmatpush3.bf16.msra.mxu0 %v4878_v47 }
 0xa53   :  { %4886 = vmatprep.subr.bf16.mxu0 %v5067_v13 }
 0xa55   :  { %4487 = vmatmul.mubr.msk.f32.vlgmr.msra.gmra.mrb[24].mxu0 %vm348_vm2, %v2053_v44 }
 0xa56   :  { %4888 = vmatpush3.bf16.msra.mxu0 %v4887_v52  ;;  %4508 = vmatprep.mubr.msk.f32.mxu0 %vm5068_vm1, %v5069_v17 }
 0xa57   :  { %4889 = vmatprep.subr.bf16.mxu0 %v5067_v13 }
 0xa5a   :  { %4891 = vmatpush3.bf16.msra.mxu0 %v4890_v55 }
 0xa5b   :  { %4898 = vmatprep.subr.bf16.mxu0 %v5067_v13 }
 0xa5d   :  { %4509 = vmatmul.mubr.msk.f32.vlgmr.msra.gmra.mrb[26].mxu0 %vm348_vm2, %v2053_v44 }
 0xa5e   :  { %4900 = vmatpush3.bf16.msra.mxu0 %v5402_v48  ;;  %4530 = vmatprep.mubr.msk.f32.mxu0 %vm5068_vm1, %v5069_v17 }
 0xa5f   :  { %4901 = vmatprep.subr.bf16.mxu0 %v5067_v13 }
 0xa62   :  { %4903 = vmatpush3.bf16.msra.mxu0 %v5414_v51 }
 0xa63   :  { %4544 = vmatprep.subr.mxu0 %v5069_v17 }
 0xa72   :  { %v2056_v56 = vpop.xlane.xlu1 %2055 }
 0xa73   :  { %v2057_v57 = vmul.f32 0.03125, %v2056_v56 }
 0xa75   :  { %v2058_v58 = vsub.f32 %v5615_v31, %v2057_v57 }
 0xa77   :  { %v2059_v59 = vmul.f32 %v2058_v58, %v2058_v58 }
 0xa79   :  { %v2060_v62 = vsel %vm298_vm0, %v2059_v59, 0.0 }
 0xa7a   :  { %2061 = vadd.xlane.f32.xlu1 %v2060_v62 }
 0xb07   :  { %v2062_v63 = vpop.xlane.xlu1 %2061 }
 0xb08   :  { %v2063_v0 = vmul.f32 0.03125, %v2062_v63 }
 0xb0a   :  { %v2064_v1 = vadd.f32 1e-05, %v2063_v0 }
 0xb0c   :  { %5017 = vrsqrt.f32 %v2064_v1 }
 0xb16   :  { %v5018_v2 = vpop.eup %5017 }
 0xb17   :  { %v2066_v3 = vmul.f32 %v5018_v2, %v2058_v58 }
 0xb19   :  { %v2067_v4 = vmul.f32 %v3936_v39, %v2066_v3 }
 0xb1b   :  { %v2068_v5 = vadd.f32 %v3937_v61, %v2067_v4 }
 0xb1d   :  { %4476 = vmatmul.mubr.msk.f32.vlgmr.msra.gmra.mrb[22].mxu1 %vm348_vm2, %v2068_v5 }
 0xb1e   :  { %4882 = vmatpush3.bf16.msra.mxu1 %v4875_v43  ;;  %4497 = vmatprep.mubr.msk.f32.mxu1 %vm5068_vm1, %v5069_v17 }
 0xb1f   :  { %4883 = vmatprep.subr.bf16.mxu1 %v5067_v13 }
 0xb20   :  { %v2144_v6 = vpop.f32.mrb[22].mxu0 }
 0xb21   :  { %v4466_v7 = vpop.f32.mrb[23].mxu0  ;;  %v2145_v11 = vadd.f32 %v3938_v8, %v2144_v6 }
 0xb22   :  { %4885 = vmatpush3.bf16.msra.mxu1 %v4878_v47 }
 0xb23   :  { %4892 = vmatprep.subr.bf16.mxu1 %v5067_v13 }
 0xb25   :  { %4498 = vmatmul.mubr.msk.f32.vlgmr.msra.gmra.mrb[24].mxu1 %vm348_vm2, %v2068_v5 }
 0xb26   :  { %4894 = vmatpush3.bf16.msra.mxu1 %v4887_v52  ;;  %4519 = vmatprep.mubr.msk.f32.mxu1 %vm5068_vm1, %v5069_v17 }
 0xb27   :  { %4895 = vmatprep.subr.bf16.mxu1 %v5067_v13 }
 0xb28   :  { %v2293_v10 = vpop.f32.mrb[24].mxu0 }
 0xb29   :  { %v2294_v14 = vadd.f32 %v3941_v9, %v2293_v10  ;;  %v4488_v16 = vpop.f32.mrb[25].mxu0  ;;  %v3915_v10 = vld [vmem:[%s5897_s13 + $0x20] sm:$0xff] }
 0xb2a   :  { %4897 = vmatpush3.bf16.msra.mxu1 %v4890_v55 }
 0xb2b   :  { %v2513_v18 = vmul.f32 %v2294_v14, %v2145_v11  ;;  %4904 = vmatprep.subr.bf16.mxu1 %v5067_v13 }
 0xb2d   :  { %4531 = vmatmul.mubr.msk.f32.vlgmr.msra.gmra.mrb[28].mxu0 %vm348_vm2, %v2513_v18  ;;  %4520 = vmatmul.mubr.msk.f32.vlgmr.msra.gmra.mrb[26].mxu1 %vm348_vm2, %v2068_v5 }
 0xb2e   :  { %4906 = vmatpush3.bf16.msra.mxu1 %v5402_v48  ;;  %4541 = vmatprep.mubr.msk.f32.mxu1 %vm5068_vm1, %v5069_v17 }
 0xb2f   :  { %4907 = vmatprep.subr.bf16.mxu1 %v5067_v13  ;;  %4545 = vmatpush3.msk.msra.mxu0 %vm951_vm3, %v5435_v12 }
 0xb30   :  { %v2439_v20 = vpop.f32.mrb[26].mxu0  ;;  %4546 = vmatprep.mubr.msk.f32.mxu0 %vm5068_vm1, %v5069_v17  ;;  %4910 = vmatprep.subr.bf16.mxu0 %v5067_v13 }
 0xb31   :  { %v4510_v21 = vpop.f32.mrb[27].mxu0 }
 0xb32   :  { %4909 = vmatpush3.bf16.msra.mxu1 %v5414_v51  ;;  %v3917_v21 = vld [vmem:[%s5897_s13 + $0x30] sm:$0xff] }
 0xb33   :  { %4549 = vmatprep.subr.mxu1 %v5069_v17 }
 0xbf0   :  { %v2217_v22 = vpop.f32.mrb[22].mxu1 }
 0xbf1   :  { %v4477_v23 = vpop.f32.mrb[23].mxu1  ;;  %v2218_v19 = vadd.f32 %v3938_v8, %v2217_v22  ;;  %v3918_v22 = vld [vmem:[%s5897_s13 + $0x38] sm:$0xff] }
 0xbf2   :  { %v4926_v23 = vpack.c.bf16 %v3918_v22, %v3917_v21 }
 0xbf3   :  { %v2823_v49 = vmul.f32 %v2294_v14, %v2218_v19 }
 0xbf8   :  { %v2363_v24 = vpop.f32.mrb[24].mxu1 }
 0xbf9   :  { %v2364_v25 = vadd.f32 %v3941_v9, %v2363_v24  ;;  %v4499_v26 = vpop.f32.mrb[25].mxu1 }
 0xbfb   :  { %v2588_v60 = vmul.f32 %v2364_v25, %v2145_v11  ;;  %v2898_v27 = vmul.f32 %v2364_v25, %v2218_v19  ;;  %v3916_v11 = vld [vmem:[%s5897_s13 + $0x28] sm:$0xff] }
 0xbfc   :  { %v4923_v16 = vpack.c.bf16 %v3916_v11, %v3915_v10  ;;  %v3933_v10 = vld [vmem:[%s5903_s19 + $0x70] sm:$0xff]  ;;  %v3934_v11 = vld [vmem:[%s5903_s19 + $0x78] sm:$0xff] }
 0xbfd   :  { %4542 = vmatmul.mubr.msk.f32.vlgmr.msra.gmra.mrb[28].mxu1 %vm348_vm2, %v2588_v60 }
 0xbfe   :  { %4550 = vmatpush3.msk.msra.mxu1 %vm951_vm3, %v5435_v12  ;;  %4551 = vmatprep.mubr.msk.f32.mxu1 %vm5068_vm1, %v5069_v17 }
 0xbff   :  { %4916 = vmatprep.subr.bf16.mxu1 %v5067_v13 }
 0xc00   :  { %v2583_v28 = vpop.f32.mrb[28].mxu0  ;;  %v2509_v29 = vpop.f32.mrb[26].mxu1 }
 0xc01   :  { %v4532_v30 = vpop.f32.mrb[29].mxu0  ;;  %v4521_v32 = vpop.f32.mrb[27].mxu1  ;;  %v2587_v35 = vmul.f32 0.35355338, %v2583_v28 }
 0xcd0   :  { %v2658_v33 = vpop.f32.mrb[28].mxu1 }
 0xcd1   :  { %v2662_v37 = vmul.f32 0.35355338, %v2658_v33  ;;  %v4543_v38 = vpop.f32.mrb[29].mxu1 }
 0xcd3   :  { %v2663_v39 = vmax.f32 %v2587_v35, %v2662_v37 }
 0xcd5   :  { %v2664_v40 = vsub.f32 %v2587_v35, %v2663_v39  ;;  %v2667_v34 = vsub.f32 %v2662_v37, %v2663_v39 }
 0xcd7   :  { %v2665_v41 = vmul.f32 1.442695, %v2664_v40  ;;  %v2668_v61 = vmul.f32 1.442695, %v2667_v34 }
 0xcd9   :  { %5019 = vpow2.f32 %v2665_v41 }
 0xcda   :  { %5021 = vpow2.f32 %v2668_v61  ;;  %v3922_v61 = vld [vmem:[%s5901_s17 + $0x20] sm:$0xff] }
 0xce3   :  { %v5020_v42 = vpop.eup %5019 }
 0xce4   :  { %v5022_v43 = vpop.eup %5021 }
 0xce5   :  { %v2670_v44 = vadd.f32 %v5022_v43, %v5020_v42 }
 0xce7   :  { %5023 = vrcp.f32 %v2670_v44  ;;  %v3925_v44 = vld [vmem:[%s5901_s17 + $0x38] sm:$0xff] }
 0xcf1   :  { %v5024_v45 = vpop.eup %5023 }
 0xcf2   :  { %v2672_v46 = vmul.f32 %v5024_v45, %v5020_v42  ;;  %v2747_v47 = vmul.f32 %v5024_v45, %v5022_v43  ;;  %v3924_v43 = vld [vmem:[%s5901_s17 + $0x30] sm:$0xff] }
 0xcf3   :  { %v4938_v45 = vpack.c.bf16 %v3925_v44, %v3924_v43 }
 0xcf4   :  { %4547 = vmatmul.mubr.msk.f32.vlgmr.msra.gmra.mrb[30].mxu0 %vm947_vm4, %v2672_v46  ;;  %4552 = vmatmul.mubr.msk.f32.vlgmr.msra.gmra.mrb[30].mxu1 %vm947_vm4, %v2747_v47 }
 0xcf5   :  { %4912 = vmatpush3.bf16.msra.mxu0 %v5402_v48  ;;  %4918 = vmatpush3.bf16.msra.mxu1 %v5402_v48  ;;  %v3944_v48 = vld [vmem:[%s5896_s12 + $0x1] ss:$0 sm:$0xff] }
 0xcf6   :  { %4913 = vmatprep.subr.bf16.mxu0 %v5067_v13  ;;  %4919 = vmatprep.subr.bf16.mxu1 %v5067_v13  ;;  %v2510_v50 = vadd.f32 %v3944_v48, %v2509_v29  ;;  %v3960_v29 = vld [vmem:[%s5898_s14 + $0x1] ss:$0 sm:$0xff] }
 0xcf7   :  { %4562 = vmatprep.mubr.msk.f32.mxu0 %vm5068_vm1, %v5069_v17  ;;  %4573 = vmatprep.mubr.msk.f32.mxu1 %vm5068_vm1, %v5069_v17 }
 0xcf9   :  { %4915 = vmatpush3.bf16.msra.mxu0 %v5414_v51  ;;  %4921 = vmatpush3.bf16.msra.mxu1 %v5414_v51  ;;  %v2440_v51 = vadd.f32 %v3944_v48, %v2439_v20 }
 0xcfa   :  { %4576 = vmatprep.subr.mxu0 %v5069_v17  ;;  %4581 = vmatprep.subr.mxu1 %v5069_v17 }
 0xcfc   :  { %4563 = vmatmul.mubr.msk.f32.vlgmr.msra.gmra.mrb[32].mxu0 %vm348_vm2, %v2823_v49  ;;  %4574 = vmatmul.mubr.msk.f32.vlgmr.msra.gmra.mrb[32].mxu1 %vm348_vm2, %v2898_v27 }
 0xcfd   :  { %4577 = vmatpush3.msk.msra.mxu0 %vm951_vm3, %v5435_v12  ;;  %4582 = vmatpush3.msk.msra.mxu1 %vm951_vm3, %v5435_v12 }
 0xcfe   :  { %4578 = vmatprep.mubr.msk.f32.mxu0 %vm5068_vm1, %v5069_v17  ;;  %4583 = vmatprep.mubr.msk.f32.mxu1 %vm5068_vm1, %v5069_v17 }
 0xcff   :  { %4922 = vmatprep.subr.bf16.mxu0 %v5067_v13  ;;  %4928 = vmatprep.subr.bf16.mxu1 %v5067_v13 }
 0xdc7   :  { %v2742_v52 = vpop.f32.mrb[30].mxu0  ;;  %v2817_v53 = vpop.f32.mrb[30].mxu1 }
 0xdc8   :  { %v2746_v54 = vmul.f32 %v2742_v52, %v2440_v51  ;;  %v2821_v12 = vmul.f32 %v2817_v53, %v2510_v50  ;;  %v4548_v55 = vpop.f32.mrb[31].mxu0  ;;  %v4553_v56 = vpop.f32.mrb[31].mxu1 }
 0xdca   :  { %v2822_v57 = vadd.f32 %v2821_v12, %v2746_v54  ;;  %v3962_v12 = vld [vmem:[%s5899_s15 + $0x1] ss:$0 sm:$0xff] }
 0xdcf   :  { %v2893_v58 = vpop.f32.mrb[32].mxu0  ;;  %v2968_v59 = vpop.f32.mrb[32].mxu1 }
 0xdd0   :  { %v2897_v62 = vmul.f32 0.35355338, %v2893_v58  ;;  %v2972_v63 = vmul.f32 0.35355338, %v2968_v59  ;;  %v4564_v0 = vpop.f32.mrb[33].mxu0  ;;  %v4575_v1 = vpop.f32.mrb[33].mxu1 }
 0xdd1   :  { %v3927_v1 = vld [vmem:[%s5903_s19 + $0x40] sm:$0xff] }
 0xdd2   :  { %v2973_v2 = vmax.f32 %v2897_v62, %v2972_v63 }
 0xdd4   :  { %v2974_v3 = vsub.f32 %v2897_v62, %v2973_v2  ;;  %v2977_v4 = vsub.f32 %v2972_v63, %v2973_v2  ;;  %v3928_v2 = vld [vmem:[%s5903_s19 + $0x48] sm:$0xff] }
 0xdd6   :  { %v2975_v5 = vmul.f32 1.442695, %v2974_v3  ;;  %v2978_v6 = vmul.f32 1.442695, %v2977_v4  ;;  %v4947_v3 = vpack.c.bf16 %v3928_v2, %v3927_v1  ;;  %v3929_v4 = vld [vmem:[%s5903_s19 + $0x50] sm:$0xff] }
 0xdd8   :  { %5025 = vpow2.f32 %v2975_v5  ;;  %v3930_v5 = vld [vmem:[%s5903_s19 + $0x58] sm:$0xff] }
 0xdd9   :  { %5027 = vpow2.f32 %v2978_v6  ;;  %v4950_v6 = vpack.c.bf16 %v3930_v5, %v3929_v4 }
 0xde2   :  { %v5026_v7 = vpop.eup %5025 }
 0xde3   :  { %v5028_v8 = vpop.eup %5027 }
 0xde4   :  { %v2980_v9 = vadd.f32 %v5028_v8, %v5026_v7 }
 0xde6   :  { %5029 = vrcp.f32 %v2980_v9 }
 0xdf0   :  { %v5030_v14 = vpop.eup %5029 }
 0xdf1   :  { %v2982_v18 = vmul.f32 %v5030_v14, %v5026_v7  ;;  %v3057_v20 = vmul.f32 %v5030_v14, %v5028_v8  ;;  %v3931_v7 = vld [vmem:[%s5903_s19 + $0x60] sm:$0xff]  ;;  %v3932_v8 = vld [vmem:[%s5903_s19 + $0x68] sm:$0xff]  ;;  %v4956_v14 = vpack.c.bf16 %v3934_v11, %v3933_v10 }
 0xdf2   :  { %v4953_v9 = vpack.c.bf16 %v3932_v8, %v3931_v7 }
 0xdf3   :  { %4579 = vmatmul.mubr.msk.f32.vlgmr.msra.gmra.mrb[34].mxu0 %vm947_vm4, %v2982_v18  ;;  %4584 = vmatmul.mubr.msk.f32.vlgmr.msra.gmra.mrb[34].mxu1 %vm947_vm4, %v3057_v20 }
 0xdf4   :  { %4924 = vmatpush3.bf16.msra.mxu0 %v4923_v16  ;;  %4594 = vmatprep.mubr.msk.f32.mxu0 %vm5068_vm1, %v5069_v17 }
 0xdf5   :  { %4925 = vmatprep.subr.bf16.mxu0 %v5067_v13  ;;  %4930 = vmatpush3.bf16.msra.mxu1 %v4923_v16 }
 0xdf6   :  { %4931 = vmatprep.subr.bf16.mxu1 %v5067_v13  ;;  %4605 = vmatprep.mubr.msk.f32.mxu1 %vm5068_vm1, %v5069_v17 }
 0xdf8   :  { %4927 = vmatpush3.bf16.msra.mxu0 %v4926_v23 }
 0xdf9   :  { %4933 = vmatpush3.bf16.msra.mxu1 %v4926_v23  ;;  %4934 = vmatprep.subr.bf16.mxu0 %v5067_v13 }
 0xdfa   :  { %4940 = vmatprep.subr.bf16.mxu1 %v5067_v13 }
 0xdfb   :  { %4595 = vmatmul.mubr.msk.f32.vlgmr.msra.gmra.mrb[36].mxu0 %vm348_vm2, %v2822_v57 }
 0xdfc   :  { %4616 = vmatprep.mubr.msk.f32.mxu0 %vm5068_vm1, %v5069_v17 }
 0xec6   :  { %v3052_v24 = vpop.f32.mrb[34].mxu0  ;;  %v3127_v19 = vpop.f32.mrb[34].mxu1 }
 0xec7   :  { %v3056_v25 = vmul.f32 %v3052_v24, %v2440_v51  ;;  %v3131_v26 = vmul.f32 %v3127_v19, %v2510_v50  ;;  %v4580_v60 = vpop.f32.mrb[35].mxu0  ;;  %v4585_v27 = vpop.f32.mrb[35].mxu1  ;;  %v3964_v19 = vld [vmem:[%s5902_s18 + $0x1] ss:$0 sm:$0xff] }
 0xec9   :  { %v3132_v28 = vadd.f32 %v3131_v26, %v3056_v25 }
 0xecb   :  { %4606 = vmatmul.mubr.msk.f32.vlgmr.msra.gmra.mrb[36].mxu1 %vm348_vm2, %v3132_v28 }
 0xecc   :  { %4627 = vmatprep.mubr.msk.f32.mxu1 %vm5068_vm1, %v5069_v17 }
 0xece   :  { %v3202_v30 = vpop.f32.mrb[36].mxu0 }
 0xecf   :  { %v3206_v32 = vadd.f32 %v3202_v30, %v5592_v15  ;;  %v4596_v33 = vpop.f32.mrb[37].mxu0  ;;  %v3923_v15 = vld [vmem:[%s5901_s17 + $0x28] sm:$0xff] }
 0xed0   :  { %v4935_v42 = vpack.c.bf16 %v3923_v15, %v3922_v61 }
 0xed1   :  { %v5764_v35 = vadd.f32 %v3960_v29, %v3206_v32 }
 0xed2   :  { %4936 = vmatpush3.bf16.msra.mxu0 %v4935_v42  ;;  %4942 = vmatpush3.bf16.msra.mxu1 %v4935_v42 }
 0xed3   :  { %v3289_v37 = vsel %vm298_vm0, %v5764_v35, 0.0  ;;  %4937 = vmatprep.subr.bf16.mxu0 %v5067_v13  ;;  %4943 = vmatprep.subr.bf16.mxu1 %v5067_v13 }
 0xed4   :  { %3290 = vadd.xlane.f32.xlu0 %v3289_v37 }
 0xed6   :  { %4939 = vmatpush3.bf16.msra.mxu0 %v4938_v45  ;;  %4945 = vmatpush3.bf16.msra.mxu1 %v4938_v45 }
 0xed7   :  { %4946 = vmatprep.subr.bf16.mxu0 %v5067_v13  ;;  %4958 = vmatprep.subr.bf16.mxu1 %v5067_v13 }
 0xf61   :  { %v3291_v38 = vpop.xlane.xlu0 %3290 }
 0xf62   :  { %v3292_v39 = vmul.f32 0.03125, %v3291_v38 }
 0xf64   :  { %v3293_v40 = vsub.f32 %v5764_v35, %v3292_v39 }
 0xf66   :  { %v3294_v34 = vmul.f32 %v3293_v40, %v3293_v40 }
 0xf68   :  { %v3295_v41 = vsel %vm298_vm0, %v3294_v34, 0.0 }
 0xf69   :  { %3296 = vadd.xlane.f32.xlu0 %v3295_v41 }
 0xf9e   :  { %v3283_v46 = vpop.f32.mrb[36].mxu1 }
 0xf9f   :  { %v3287_v47 = vadd.f32 %v3283_v46, %v5615_v31  ;;  %v4607_v49 = vpop.f32.mrb[37].mxu1  ;;  %v3963_v31 = vld [vmem:[%s5900_s16 + $0x1] ss:$0 sm:$0xff] }
 0xfa1   :  { %v5787_v48 = vadd.f32 %v3960_v29, %v3287_v47 }
 0xfa3   :  { %v3316_v51 = vsel %vm298_vm0, %v5787_v48, 0.0 }
 0xfa4   :  { %3317 = vadd.xlane.f32.xlu1 %v3316_v51 }
 0xff6   :  { %v3297_v50 = vpop.xlane.xlu0 %3296 }
 0xff7   :  { %v3298_v52 = vmul.f32 0.03125, %v3297_v50 }
 0xff9   :  { %v3299_v53 = vadd.f32 1e-05, %v3298_v52 }
 0xffb   :  { %5031 = vrsqrt.f32 %v3299_v53 }
0x1005   :  { %v5032_v54 = vpop.eup %5031 }
0x1006   :  { %v3301_v55 = vmul.f32 %v5032_v54, %v3293_v40  ;;  %v3693_v54 = vld [vmem:[%s5905_s21] sm:$0xff] }
0x1008   :  { %v3308_v56 = vmul.f32 %v3962_v12, %v3301_v55 }
0x100a   :  { %v3315_v57 = vadd.f32 %v3963_v31, %v3308_v56  ;;  %v3696_v56 = vld [vmem:[%s5905_s21 + $0x18] sm:$0xff] }
0x100c   :  { %4617 = vmatmul.mubr.msk.f32.vlgmr.msra.gmra.mrb[38].mxu0 %vm348_vm2, %v3315_v57 }
0x100d   :  { %4646 = vmatprep.mubr.msk.f32.mxu0 %vm5068_vm1, %v5069_v17  ;;  %4948 = vmatpush3.bf16.msra.mxu0 %v4947_v3 }
0x100e   :  { %4949 = vmatprep.subr.bf16.mxu0 %v5067_v13 }
0x1011   :  { %4951 = vmatpush3.bf16.msra.mxu0 %v4950_v6 }
0x1012   :  { %4952 = vmatprep.subr.bf16.mxu0 %v5067_v13 }
0x1015   :  { %4954 = vmatpush3.bf16.msra.mxu0 %v4953_v9 }
0x1016   :  { %4955 = vmatprep.subr.bf16.mxu0 %v5067_v13 }
0x1019   :  { %4957 = vmatpush3.bf16.msra.mxu0 %v4956_v14 }
0x101a   :  { %4970 = vmatprep.subr.bf16.mxu0 %v5067_v13 }
0x1031   :  { %v3318_v58 = vpop.xlane.xlu1 %3317 }
0x1032   :  { %v3319_v59 = vmul.f32 0.03125, %v3318_v58 }
0x1034   :  { %v3320_v62 = vsub.f32 %v5787_v48, %v3319_v59 }
0x1036   :  { %v3321_v63 = vmul.f32 %v3320_v62, %v3320_v62 }
0x1038   :  { %v3322_v0 = vsel %vm298_vm0, %v3321_v63, 0.0 }
0x1039   :  { %3323 = vadd.xlane.f32.xlu1 %v3322_v0 }
0x10c6   :  { %v3324_v16 = vpop.xlane.xlu1 %3323 }
0x10c7   :  { %v3325_v18 = vmul.f32 0.03125, %v3324_v16 }
0x10c9   :  { %v3326_v20 = vadd.f32 1e-05, %v3325_v18 }
0x10cb   :  { %5033 = vrsqrt.f32 %v3326_v20 }
0x10d5   :  { %v5034_v21 = vpop.eup %5033 }
0x10d6   :  { %v3328_v22 = vmul.f32 %v5034_v21, %v3320_v62 }
0x10d8   :  { %v3329_v23 = vmul.f32 %v3962_v12, %v3328_v22  ;;  %v3694_v12 = vld [vmem:[%s5905_s21 + $0x8] sm:$0xff] }
0x10d9   :  { %v4971_v55 = vpack.c.bf16 %v3694_v12, %v3693_v54 }
0x10da   :  { %v3330_v24 = vadd.f32 %v3963_v31, %v3329_v23  ;;  %v3695_v31 = vld [vmem:[%s5905_s21 + $0x10] sm:$0xff] }
0x10db   :  { %v4974_v57 = vpack.c.bf16 %v3696_v56, %v3695_v31 }
0x10dc   :  { %4628 = vmatmul.mubr.msk.f32.vlgmr.msra.gmra.mrb[38].mxu1 %vm348_vm2, %v3330_v24 }
0x10dd   :  { %4960 = vmatpush3.bf16.msra.mxu1 %v4947_v3  ;;  %4665 = vmatprep.mubr.msk.f32.mxu1 %vm5068_vm1, %v5069_v17 }
0x10de   :  { %4961 = vmatprep.subr.bf16.mxu1 %v5067_v13 }
0x10df   :  { %v3406_v25 = vpop.f32.mrb[38].mxu0 }
0x10e0   :  { %v3407_v26 = vadd.f32 %v3964_v19, %v3406_v25  ;;  %v4618_v60 = vpop.f32.mrb[39].mxu0 }
0x10e1   :  { %4963 = vmatpush3.bf16.msra.mxu1 %v4950_v6 }
0x10e2   :  { %v3411_v27 = vmul.f32 0.70710677, %v3407_v26  ;;  %4964 = vmatprep.subr.bf16.mxu1 %v5067_v13  ;;  %v3410_v50 = vmul.f32 0.5, %v3407_v26 }
0x10e4   :  { %v3414_v28 = vand.u32 2147483647, %v3411_v27  ;;  %vm3412_vm8 = vcmp.ge.f32.partialorder %v3411_v27, 0.0  ;;  %v3968_v27 = vld [vmem:[%s5904_s20 + $0x1] ss:$0 sm:$0xff]  ;;  %s5071_s20 = smov [#allocation2]  }
0x10e5   :  { %4966 = vmatpush3.bf16.msra.mxu1 %v4953_v9  ;;  %v3413_v49 = vsel %vm3412_vm8, 1.0, %v5070_v36  ;;  %s3853_s16 = sshll.u32 %s5071_s20, 4  ;;  %s3854_s16 = int_to_ptr.vmem [resolvable:$true] %s3853_s16 }
0x10e6   :  { %v3415_v29 = vmul.f32 0.3275911, %v3414_v28  ;;  %4967 = vmatprep.subr.bf16.mxu1 %v5067_v13  ;;  %v3428_v32 = vsub.f32 0.0, %v3414_v28  ;;  %s5043_s12 = scalar_lea.vmem %s3854_s16, 32  ;;  %p5048_p1 = scmp.lt.s32.totalorder %s3854_s16, %s3854_s16 }
0x10e7   :  { %p5044_p0 = scmp.ne.s32.totalorder %s3854_s16, %s5043_s12  ;;  %p5049_p2 = scmp.lt.s32.totalorder %s5043_s12, %s5043_s12 }
0x10e8   :  { %v3416_v30 = vadd.f32 1.0, %v3415_v29  ;;  %v3429_v37 = vmul.f32 %v3428_v32, %v3414_v28 }
0x10e9   :  { %4969 = vmatpush3.bf16.msra.mxu1 %v4956_v14  ;;  %p5050_p3 = por %p5049_p2, %p5048_p1 }
0x10ea   :  { %5035 = vrcp.f32 %v3416_v30  ;;  %4976 = vmatprep.subr.bf16.mxu1 %v5067_v13  ;;  %v3430_v40 = vmul.f32 1.442695, %v3429_v37 }
0x10eb   :  { %p5051_p4 = pnand %p5050_p3, %p5044_p0 }
0x10ec   :  { %5037 = vpow2.f32 %v3430_v40 }
0x10f4   :  { %v5036_v33 = vpop.eup %5035 }
0x10f5   :  { %v3419_v38 = vmul.f32 1.0614054, %v5036_v33 }
0x10f6   :  { %v5038_v45 = vpop.eup %5037 }
0x10f7   :  { %v3420_v39 = vadd.f32 -1.4531521, %v3419_v38 }
0x10f9   :  { %v3421_v34 = vmul.f32 %v5036_v33, %v3420_v39 }
0x10fb   :  { %v3422_v41 = vadd.f32 1.4214138, %v3421_v34 }
0x10fd   :  { %v3423_v61 = vmul.f32 %v5036_v33, %v3422_v41 }
0x10ff   :  { %v3424_v15 = vadd.f32 -0.28449672, %v3423_v61 }
0x1101   :  { %v3425_v42 = vmul.f32 %v5036_v33, %v3424_v15 }
0x1103   :  { %v3426_v43 = vadd.f32 0.2548296, %v3425_v42 }
0x1105   :  { %v3427_v44 = vmul.f32 %v5036_v33, %v3426_v43 }
0x1107   :  { %v3432_v46 = vmul.f32 %v5038_v45, %v3427_v44 }
0x1109   :  { %v3433_v47 = vsub.f32 1.0, %v3432_v46 }
0x110b   :  { %v3434_v51 = vmul.f32 %v3433_v47, %v3413_v49 }
0x110d   :  { %v3435_v52 = vadd.f32 1.0, %v3434_v51 }
0x110f   :  { %v3436_v53 = vmul.f32 %v3435_v52, %v3410_v50 }
0x1111   :  { %4647 = vmatmul.mubr.msk.f32.vlgmr.msra.gmra.mrb[40].mxu0 %vm1816_vm6, %v3436_v53 }
0x1112   :  { %4676 = vmatprep.mubr.msk.f32.mxu0 %vm5068_vm1, %v5069_v17  ;;  %4972 = vmatpush3.bf16.msra.mxu0 %v4971_v55 }
0x1113   :  { %4973 = vmatprep.subr.bf16.mxu0 %v5067_v13 }
0x1116   :  { %4975 = vmatpush3.bf16.msra.mxu0 %v4974_v57 }
0x11af   :  { %v3506_v58 = vpop.f32.mrb[38].mxu1 }
0x11b0   :  { %v3507_v59 = vadd.f32 %v3964_v19, %v3506_v58  ;;  %v4629_v62 = vpop.f32.mrb[39].mxu1 }
0x11b2   :  { %v3511_v63 = vmul.f32 0.70710677, %v3507_v59  ;;  %v3510_v25 = vmul.f32 0.5, %v3507_v59 }
0x11b4   :  { %v3514_v0 = vand.u32 2147483647, %v3511_v63  ;;  %vm3512_vm9 = vcmp.ge.f32.partialorder %v3511_v63, 0.0 }
0x11b5   :  { %v3513_v24 = vsel %vm3512_vm9, 1.0, %v5070_v36 }
0x11b6   :  { %v3515_v1 = vmul.f32 0.3275911, %v3514_v0  ;;  %v3528_v3 = vsub.f32 0.0, %v3514_v0 }
0x11b8   :  { %v3516_v2 = vadd.f32 1.0, %v3515_v1  ;;  %v3529_v5 = vmul.f32 %v3528_v3, %v3514_v0 }
0x11ba   :  { %5039 = vrcp.f32 %v3516_v2  ;;  %v3530_v8 = vmul.f32 1.442695, %v3529_v5 }
0x11bc   :  { %5041 = vpow2.f32 %v3530_v8 }
0x11c4   :  { %v5040_v4 = vpop.eup %5039 }
0x11c5   :  { %v3519_v6 = vmul.f32 1.0614054, %v5040_v4 }
0x11c6   :  { %v5042_v21 = vpop.eup %5041 }
0x11c7   :  { %v3520_v7 = vadd.f32 -1.4531521, %v3519_v6 }
0x11c9   :  { %v3521_v9 = vmul.f32 %v5040_v4, %v3520_v7 }
0x11cb   :  { %v3522_v10 = vadd.f32 1.4214138, %v3521_v9 }
0x11cd   :  { %v3523_v11 = vmul.f32 %v5040_v4, %v3522_v10 }
0x11cf   :  { %v3524_v14 = vadd.f32 -0.28449672, %v3523_v11 }
0x11d1   :  { %v3525_v16 = vmul.f32 %v5040_v4, %v3524_v14 }
0x11d3   :  { %v3526_v18 = vadd.f32 0.2548296, %v3525_v16 }
0x11d5   :  { %v3527_v20 = vmul.f32 %v5040_v4, %v3526_v18 }
0x11d7   :  { %v3532_v22 = vmul.f32 %v5042_v21, %v3527_v20 }
0x11d9   :  { %v3533_v23 = vsub.f32 1.0, %v3532_v22 }
0x11db   :  { %v3534_v19 = vmul.f32 %v3533_v23, %v3513_v24 }
0x11dd   :  { %v3535_v26 = vadd.f32 1.0, %v3534_v19 }
0x11df   :  { %v3536_v60 = vmul.f32 %v3535_v26, %v3510_v25 }
0x11e1   :  { %4666 = vmatmul.mubr.msk.f32.vlgmr.msra.gmra.mrb[40].mxu1 %vm1816_vm6, %v3536_v60 }
0x11e2   :  { %4978 = vmatpush3.bf16.msra.mxu1 %v4971_v55  ;;  %4687 = vmatprep.mubr.msk.f32.mxu1 %vm5068_vm1, %v5069_v17 }
0x11e3   :  { %4979 = vmatprep.subr.bf16.mxu1 %v5067_v13  ;;  %v3697_v13 = vld [vmem:[%s5906_s22] sm:$0x1] }
0x11e4   :  { %v3606_v28 = vpop.f32.mrb[40].mxu0 }
0x11e5   :  { %v3610_v29 = vadd.f32 %v3606_v28, %v5764_v35  ;;  %v4648_v36 = vpop.f32.mrb[41].mxu0 }
0x11e6   :  { %4981 = vmatpush3.bf16.msra.mxu1 %v4974_v57 }
0x11e7   :  { %v3617_v30 = vadd.f32 %v3968_v27, %v3610_v29 }
0x11e9   :  { %4677 = vmatmul.mubr.msk.f32.vlgmr.msra.gmra.mrb[42].mxu0 %vm348_vm2, %v3617_v30 }
0x12b4   :  { %v3687_v32 = vpop.f32.mrb[40].mxu1 }
0x12b5   :  { %v3691_v33 = vadd.f32 %v3687_v32, %v5787_v48  ;;  %v4667_v37 = vpop.f32.mrb[41].mxu1 }
0x12b7   :  { %v3692_v38 = vadd.f32 %v3968_v27, %v3691_v33 }
0x12b9   :  { %4688 = vmatmul.mubr.msk.f32.vlgmr.msra.gmra.mrb[42].mxu1 %vm348_vm2, %v3692_v38 }
0x12bc   :  { %v3767_v17 = vpop.f32.mrb[42].mxu0 }
0x12bd   :  { %v3768_v39 = vadd.f32 %v3767_v17, %v3697_v13  ;;  %v4678_v35 = vpop.f32.mrb[43].mxu0 }
0x12bf   :  { %3772 = vst.msk [vmem:[#allocation2] sm:$0x1] %vm3771_vm10, %v3768_v39 }
0x138c   :  { %v3842_v40 = vpop.f32.mrb[42].mxu1 }
0x138d   :  { %v3843_v34 = vadd.f32 %v3842_v40, %v3697_v13  ;;  %v4689_v41 = vpop.f32.mrb[43].mxu1 }
0x138f   :  { %3846 = vst.msk [vmem:[#allocation2 + $0x1] sm:$0x1] %vm3771_vm10, %v3843_v34 }
0x1390   :  { %5054 = shalt.err (!%p5051_p4)
}
0x1391   :  { %s5055_s5 = scalar_lea.hbm %s5907_s23, 32 }
0x1392   :  { %p5056_p5 = scmp.ne.s32.totalorder %s5907_s23, %s5055_s5  ;;  %p5059_p6 = scmp.lt.u32.totalorder %s5055_s5, %s5907_s23 }
0x1394   :  { %p5061_p7 = pnand %p5059_p6, %p5056_p5 }
0x1396   :  { %5064 = shalt.err (!%p5061_p7)
}
0x1397   :  { %3856 = dma.vmem_to_hbm [thread:$0]  %s3854_s16, 32, %s5907_s23, [#allocation3]  }
0x1398   :  { %5065 = dma.done.wait [#allocation3], 32  }
0x1399   :  { %5066 = vsyncadd [#allocation3], 4294967264 }
0x139a   :  { %3860 = vsyncpa [#allocation3], 1 }

</bundles_post_ra>
